<compile_context>
chip_gen: v5e
topology: v5e:2x2
jax: 0.10.0
libtpu: 0.0.40
codegen_flags: <defaults>
</compile_context>

<pallas_src>
import jax
import jax.numpy as jnp
from jax import lax
from jax.experimental import pallas as pl
from jax.experimental.pallas import tpu as pltpu


# -----------------------------------------------------------------------------
# Fused forward kernel: all GNN layers + temporal attention + concat, one grid step.
# -----------------------------------------------------------------------------
def _make_fused_kernel(num_layers, T1, N):
    T = T1 - 1  # number of real timesteps (slice 0 is the global branch)

    def kernel(*refs):
        sup_ref, feat_ref = refs[0], refs[1]
        w_refs = refs[2:2 + num_layers]
        w1_ref, w2_ref, wv_ref, out_ref = refs[2 + num_layers:]

        sup = sup_ref[...]                      # (T1, N, N)
        x = feat_ref[...]                       # (T1, N, D_in)
        xf = None                               # flat (T1*N, D) view of x

        # ---- stacked GNN layers: out = l2_normalize(relu(sup @ x @ W), dim=1) ----
        for l in range(num_layers):
            w = w_refs[l][...]                  # (Din_l, Dout_l)
            # per-slice neighbor aggregation (batched matmul over T1 slices)
            h = jnp.einsum("tij,tjd->tid", sup, x,
                           preferred_element_type=jnp.float32)     # (T1, N, Din_l)
            # one big lane/sublane-dense matmul for the shared linear map
            hf = h.reshape(T1 * N, h.shape[-1])
            z = jnp.dot(hf, w, preferred_element_type=jnp.float32)  # (T1*N, Dout_l)
            r = jnp.maximum(z, 0.0)                                  # relu
            # dropout: identity in eval mode (stochastic op omitted)
            ss = jnp.sum(r * r, axis=1, keepdims=True)
            # F.normalize(p=2, dim=1): x / max(||x||, 1e-12)  ==  x * rsqrt(max(ss, 1e-24))
            xf = r * lax.rsqrt(jnp.maximum(ss, 1e-24))
            x = xf.reshape(T1, N, w.shape[-1])

        D = x.shape[-1]
        gbl = x[0]                              # (N, D)   global embedding
        ind = x[1:]                             # (T, N, D) per-timestep embeddings
        ind_flat = xf[N:]                       # (T*N, D) same data, flat

        # ---- temporal attention ----
        W1 = w1_ref[...]                        # (D, D)
        W2 = w2_ref[...]                        # (D, D)
        wv = wv_ref[...]                        # (1, D)  attention vector w^T

        g2 = jnp.dot(gbl, W2, preferred_element_type=jnp.float32)          # (N, D)
        s = jnp.tanh(jnp.dot(ind_flat, W1, preferred_element_type=jnp.float32)
                     + jnp.tile(g2, (T, 1)))                               # (T*N, D)
        s3 = s.reshape(T, N, D)
        e = jnp.sum(s3 * wv, axis=-1, keepdims=True)                       # (T, N, 1)

        # softmax over time per node
        e = e - jnp.max(e, axis=0, keepdims=True)
        p = jnp.exp(e)
        denom = jnp.sum(p, axis=0, keepdims=True)                          # (1, N, 1)
        alpha = p * pl.reciprocal(denom, approx=True)                      # (T, N, 1)

        agg = jnp.sum(alpha * ind, axis=0)                                 # (N, D)
        out_ref[...] = jnp.concatenate([agg, gbl], axis=1)                 # (N, 2D)

    return kernel


# -----------------------------------------------------------------------------
# STGSN_Enc forward: global branch folded in as pseudo-timestep 0, one pallas_call.
# -----------------------------------------------------------------------------
def stgsn_enc_forward(params, sup_stack, feat_stack, gbl_sup, gbl_feat, num_nodes):
    del num_nodes  # implicit in the shapes
    T, N, _ = sup_stack.shape
    D_in = feat_stack.shape[-1]
    gnn_ws = list(params["gnn_weights"])
    num_layers = len(gnn_ws)
    D_out = gnn_ws[-1].shape[-1]
    T1 = T + 1

    sup_all = jnp.concatenate([gbl_sup[None], sup_stack], axis=0).astype(jnp.float32)
    feat_all = jnp.concatenate([gbl_feat[None], feat_stack], axis=0).astype(jnp.float32)

    kernel = _make_fused_kernel(num_layers, T1, N)

    in_specs = [
        pl.BlockSpec((T1, N, N), lambda i: (0, 0, 0)),
        pl.BlockSpec((T1, N, D_in), lambda i: (0, 0, 0)),
    ]
    in_specs += [pl.BlockSpec(w.shape, lambda i: (0, 0)) for w in gnn_ws]
    in_specs += [
        pl.BlockSpec((D_out, D_out), lambda i: (0, 0)),   # att W1
        pl.BlockSpec((D_out, D_out), lambda i: (0, 0)),   # att W2
        pl.BlockSpec((1, D_out), lambda i: (0, 0)),       # att w (transposed)
    ]

    return pl.pallas_call(
        kernel,
        out_shape=jax.ShapeDtypeStruct((N, 2 * D_out), jnp.float32),
        grid=(1,),
        in_specs=in_specs,
        out_specs=pl.BlockSpec((N, 2 * D_out), lambda i: (0, 0)),
        compiler_params=pltpu.CompilerParams(dimension_semantics=("arbitrary",)),
    )(sup_all, feat_all, *gnn_ws, params["att_w1"], params["att_w2"], params["att_wv"])


def _xavier_uniform(key, shape):
    fan_in, fan_out = shape[0], shape[-1]
    bound = (6.0 / (fan_in + fan_out)) ** 0.5
    return jax.random.uniform(key, shape, jnp.float32, -bound, bound)


def init_params(key, enc_dims):
    num_layers = len(enc_dims) - 1
    keys = jax.random.split(key, num_layers + 3)
    gnn_weights = [
        _xavier_uniform(keys[l], (enc_dims[l], enc_dims[l + 1])) for l in range(num_layers)
    ]
    d = enc_dims[-1]
    return {
        "gnn_weights": gnn_weights,
        "att_w1": _xavier_uniform(keys[num_layers], (d, d)),
        "att_w2": _xavier_uniform(keys[num_layers + 1], (d, d)),
        # attention vector w (D,1) stored transposed as (1, D) for lane-friendly layout
        "att_wv": _xavier_uniform(keys[num_layers + 2], (d, 1)).T,
    }


if __name__ == "__main__":
    enc_dims = [16, 32, 32]       # [D_in, hidden, D_emb]
    num_nodes = 32                # N
    win_size = 4                  # T

    key = jax.random.PRNGKey(0)
    k_param, k_sup, k_feat, k_gsup, k_gfeat = jax.random.split(key, 5)

    params = init_params(k_param, enc_dims)

    # synthetic row-normalized supports (dense normalized adjacency matrices)
    raw_sup = jax.random.uniform(k_sup, (win_size, num_nodes, num_nodes), jnp.float32)
    sup_stack = raw_sup / jnp.sum(raw_sup, axis=-1, keepdims=True)
    raw_gsup = jax.random.uniform(k_gsup, (num_nodes, num_nodes), jnp.float32)
    gbl_sup = raw_gsup / jnp.sum(raw_gsup, axis=-1, keepdims=True)

    feat_stack = jax.random.normal(k_feat, (win_size, num_nodes, enc_dims[0]), jnp.float32)
    gbl_feat = jax.random.normal(k_gfeat, (num_nodes, enc_dims[0]), jnp.float32)

    dyn_emb = stgsn_enc_forward(params, sup_stack, feat_stack, gbl_sup, gbl_feat, num_nodes)
    dyn_emb = jax.block_until_ready(dyn_emb)

    assert dyn_emb.shape == (num_nodes, 2 * enc_dims[-1])
    assert bool(jnp.all(jnp.isfinite(dyn_emb)))
    print("KERNEL_OK")
</pallas_src>

<mosaic_0001>
module attributes {stable_mosaic.version = 11 : i64} {
  func.func @kernel(%arg0: i32, %arg1: memref<5x32x32xf32, #tpu.memory_space<vmem>>, %arg2: memref<5x32x16xf32, #tpu.memory_space<vmem>>, %arg3: memref<16x32xf32, #tpu.memory_space<vmem>>, %arg4: memref<32x32xf32, #tpu.memory_space<vmem>>, %arg5: memref<32x32xf32, #tpu.memory_space<vmem>>, %arg6: memref<32x32xf32, #tpu.memory_space<vmem>>, %arg7: memref<1x32xf32, #tpu.memory_space<vmem>>, %arg8: memref<32x64xf32, #tpu.memory_space<vmem>>) attributes {dimension_semantics = [#tpu.dimension_semantics<arbitrary>], iteration_bounds = array<i64: 1>, scalar_prefetch = 0 : i64, scratch_operands = 0 : i64, tpu.core_type = #tpu.core_type<tc>, window_params = [{pipeline_mode = #tpu.pipeline_mode<synchronous>, transform_indices = @transform_0, window_bounds = array<i64: 5, 32, 32>}, {pipeline_mode = #tpu.pipeline_mode<synchronous>, transform_indices = @transform_1, window_bounds = array<i64: 5, 32, 16>}, {pipeline_mode = #tpu.pipeline_mode<synchronous>, transform_indices = @transform_2, window_bounds = array<i64: 16, 32>}, {pipeline_mode = #tpu.pipeline_mode<synchronous>, transform_indices = @transform_3, window_bounds = array<i64: 32, 32>}, {pipeline_mode = #tpu.pipeline_mode<synchronous>, transform_indices = @transform_4, window_bounds = array<i64: 32, 32>}, {pipeline_mode = #tpu.pipeline_mode<synchronous>, transform_indices = @transform_5, window_bounds = array<i64: 32, 32>}, {pipeline_mode = #tpu.pipeline_mode<synchronous>, transform_indices = @transform_6, window_bounds = array<i64: 1, 32>}, {pipeline_mode = #tpu.pipeline_mode<synchronous>, transform_indices = @transform_7, window_bounds = array<i64: 32, 64>}]} {
    %c0 = arith.constant 0 : index
    %c0_0 = arith.constant 0 : index
    %c0_1 = arith.constant 0 : index
    %0 = vector.load %arg1[%c0, %c0_0, %c0_1] : memref<5x32x32xf32, #tpu.memory_space<vmem>>, vector<5x32x32xf32>
    %c0_2 = arith.constant 0 : index
    %c0_3 = arith.constant 0 : index
    %c0_4 = arith.constant 0 : index
    %1 = vector.load %arg2[%c0_2, %c0_3, %c0_4] : memref<5x32x16xf32, #tpu.memory_space<vmem>>, vector<5x32x16xf32>
    %c0_5 = arith.constant 0 : index
    %c0_6 = arith.constant 0 : index
    %2 = vector.load %arg3[%c0_5, %c0_6] : memref<16x32xf32, #tpu.memory_space<vmem>>, vector<16x32xf32>
    "tpu.trace_start"() <{level = 10 : i32, message = "tij,tjd->tid"}> : () -> ()
    %cst = arith.constant dense<0.000000e+00> : vector<5x32x16xf32>
    %3 = tpu.matmul %0, %1, %cst {dimension_numbers = #tpu.dot_dimension_numbers<[2], [1], [1], [2], [0, 0, 0, 1, 1, 2], [0], [0]>} : vector<5x32x32xf32>, vector<5x32x16xf32>, vector<5x32x16xf32> -> vector<5x32x16xf32>
    "tpu.trace_stop"() : () -> ()
    %4 = vector.shape_cast %3 : vector<5x32x16xf32> to vector<160x16xf32>
    %cst_7 = arith.constant dense<0.000000e+00> : vector<160x32xf32>
    %5 = tpu.matmul %4, %2, %cst_7 {dimension_numbers = #tpu.dot_dimension_numbers<[1], [0], [0], [1], [0, 0, 1, 1], [], []>} : vector<160x16xf32>, vector<16x32xf32>, vector<160x32xf32> -> vector<160x32xf32>
    %cst_8 = arith.constant 0.000000e+00 : f32
    %6 = vector.broadcast %cst_8 : f32 to vector<160x32xf32>
    %7 = arith.maximumf %5, %6 : vector<160x32xf32>
    %8 = arith.mulf %7, %7 : vector<160x32xf32>
    %cst_9 = arith.constant dense<0.000000e+00> : vector<160xf32>
    %9 = vector.multi_reduction <add>, %8, %cst_9 [1] : vector<160x32xf32> to vector<160xf32>
    %10 = vector.shape_cast %9 : vector<160xf32> to vector<160x1xf32>
    %cst_10 = arith.constant 1.000000e-24 : f32
    %11 = vector.broadcast %cst_10 : f32 to vector<160x1xf32>
    %12 = arith.maximumf %10, %11 : vector<160x1xf32>
    %13 = math.rsqrt %12 : vector<160x1xf32>
    %14 = vector.broadcast %13 : vector<160x1xf32> to vector<160x32xf32>
    %15 = arith.mulf %7, %14 : vector<160x32xf32>
    %16 = vector.shape_cast %15 : vector<160x32xf32> to vector<5x32x32xf32>
    %c0_11 = arith.constant 0 : index
    %c0_12 = arith.constant 0 : index
    %17 = vector.load %arg4[%c0_11, %c0_12] : memref<32x32xf32, #tpu.memory_space<vmem>>, vector<32x32xf32>
    "tpu.trace_start"() <{level = 10 : i32, message = "tij,tjd->tid"}> : () -> ()
    %cst_13 = arith.constant dense<0.000000e+00> : vector<5x32x32xf32>
    %18 = tpu.matmul %0, %16, %cst_13 {dimension_numbers = #tpu.dot_dimension_numbers<[2], [1], [1], [2], [0, 0, 0, 1, 1, 2], [0], [0]>} : vector<5x32x32xf32>, vector<5x32x32xf32>, vector<5x32x32xf32> -> vector<5x32x32xf32>
    "tpu.trace_stop"() : () -> ()
    %19 = vector.shape_cast %18 : vector<5x32x32xf32> to vector<160x32xf32>
    %cst_14 = arith.constant dense<0.000000e+00> : vector<160x32xf32>
    %20 = tpu.matmul %19, %17, %cst_14 {dimension_numbers = #tpu.dot_dimension_numbers<[1], [0], [0], [1], [0, 0, 1, 1], [], []>} : vector<160x32xf32>, vector<32x32xf32>, vector<160x32xf32> -> vector<160x32xf32>
    %cst_15 = arith.constant 0.000000e+00 : f32
    %21 = vector.broadcast %cst_15 : f32 to vector<160x32xf32>
    %22 = arith.maximumf %20, %21 : vector<160x32xf32>
    %23 = arith.mulf %22, %22 : vector<160x32xf32>
    %cst_16 = arith.constant dense<0.000000e+00> : vector<160xf32>
    %24 = vector.multi_reduction <add>, %23, %cst_16 [1] : vector<160x32xf32> to vector<160xf32>
    %25 = vector.shape_cast %24 : vector<160xf32> to vector<160x1xf32>
    %cst_17 = arith.constant 1.000000e-24 : f32
    %26 = vector.broadcast %cst_17 : f32 to vector<160x1xf32>
    %27 = arith.maximumf %25, %26 : vector<160x1xf32>
    %28 = math.rsqrt %27 : vector<160x1xf32>
    %29 = vector.broadcast %28 : vector<160x1xf32> to vector<160x32xf32>
    %30 = arith.mulf %22, %29 : vector<160x32xf32>
    %31 = vector.shape_cast %30 : vector<160x32xf32> to vector<5x32x32xf32>
    %32 = vector.extract_strided_slice %31 {offsets = [0, 0, 0], sizes = [1, 32, 32], strides = [1, 1, 1]} : vector<5x32x32xf32> to vector<1x32x32xf32>
    %33 = vector.shape_cast %32 : vector<1x32x32xf32> to vector<32x32xf32>
    %34 = vector.extract_strided_slice %31 {offsets = [1, 0, 0], sizes = [4, 32, 32], strides = [1, 1, 1]} : vector<5x32x32xf32> to vector<4x32x32xf32>
    %35 = vector.extract_strided_slice %30 {offsets = [32, 0], sizes = [128, 32], strides = [1, 1]} : vector<160x32xf32> to vector<128x32xf32>
    %c0_18 = arith.constant 0 : index
    %c0_19 = arith.constant 0 : index
    %36 = vector.load %arg5[%c0_18, %c0_19] : memref<32x32xf32, #tpu.memory_space<vmem>>, vector<32x32xf32>
    %c0_20 = arith.constant 0 : index
    %c0_21 = arith.constant 0 : index
    %37 = vector.load %arg6[%c0_20, %c0_21] : memref<32x32xf32, #tpu.memory_space<vmem>>, vector<32x32xf32>
    %c0_22 = arith.constant 0 : index
    %c0_23 = arith.constant 0 : index
    %38 = vector.load %arg7[%c0_22, %c0_23] : memref<1x32xf32, #tpu.memory_space<vmem>>, vector<1x32xf32>
    %cst_24 = arith.constant dense<0.000000e+00> : vector<32x32xf32>
    %39 = tpu.matmul %33, %37, %cst_24 {dimension_numbers = #tpu.dot_dimension_numbers<[1], [0], [0], [1], [0, 0, 1, 1], [], []>} : vector<32x32xf32>, vector<32x32xf32>, vector<32x32xf32> -> vector<32x32xf32>
    %cst_25 = arith.constant dense<0.000000e+00> : vector<128x32xf32>
    %40 = tpu.matmul %35, %36, %cst_25 {dimension_numbers = #tpu.dot_dimension_numbers<[1], [0], [0], [1], [0, 0, 1, 1], [], []>} : vector<128x32xf32>, vector<32x32xf32>, vector<128x32xf32> -> vector<128x32xf32>
    %41 = tpu.concatenate %39, %39, %39, %39 in 0 : vector<32x32xf32>, vector<32x32xf32>, vector<32x32xf32>, vector<32x32xf32> -> vector<128x32xf32>
    %42 = arith.addf %40, %41 : vector<128x32xf32>
    %43 = math.tanh %42 : vector<128x32xf32>
    %44 = vector.shape_cast %43 : vector<128x32xf32> to vector<4x32x32xf32>
    %45 = vector.shape_cast %38 : vector<1x32xf32> to vector<1x1x32xf32>
    %46 = vector.broadcast %45 : vector<1x1x32xf32> to vector<4x32x32xf32>
    %47 = arith.mulf %44, %46 : vector<4x32x32xf32>
    %cst_26 = arith.constant dense<0.000000e+00> : vector<4x32xf32>
    %48 = vector.multi_reduction <add>, %47, %cst_26 [2] : vector<4x32x32xf32> to vector<4x32xf32>
    %49 = vector.shape_cast %48 : vector<4x32xf32> to vector<4x32x1xf32>
    %cst_27 = arith.constant dense<0xFF800000> : vector<32x1xf32>
    %50 = vector.multi_reduction <maximumf>, %49, %cst_27 [0] : vector<4x32x1xf32> to vector<32x1xf32>
    %51 = vector.shape_cast %50 : vector<32x1xf32> to vector<1x32x1xf32>
    %52 = vector.broadcast %51 : vector<1x32x1xf32> to vector<4x32x1xf32>
    %53 = arith.subf %49, %52 : vector<4x32x1xf32>
    %54 = math.exp %53 : vector<4x32x1xf32>
    %cst_28 = arith.constant dense<0.000000e+00> : vector<32x1xf32>
    %55 = vector.multi_reduction <add>, %54, %cst_28 [0] : vector<4x32x1xf32> to vector<32x1xf32>
    %56 = vector.shape_cast %55 : vector<32x1xf32> to vector<1x32x1xf32>
    %57 = tpu.reciprocal %56 {approx = true} : vector<1x32x1xf32> -> vector<1x32x1xf32>
    %58 = vector.broadcast %57 : vector<1x32x1xf32> to vector<4x32x1xf32>
    %59 = arith.mulf %54, %58 : vector<4x32x1xf32>
    %60 = vector.broadcast %59 : vector<4x32x1xf32> to vector<4x32x32xf32>
    %61 = arith.mulf %60, %34 : vector<4x32x32xf32>
    %cst_29 = arith.constant dense<0.000000e+00> : vector<32x32xf32>
    %62 = vector.multi_reduction <add>, %61, %cst_29 [0] : vector<4x32x32xf32> to vector<32x32xf32>
    %63 = tpu.concatenate %62, %33 in 1 : vector<32x32xf32>, vector<32x32xf32> -> vector<32x64xf32>
    %c0_30 = arith.constant 0 : index
    %c0_31 = arith.constant 0 : index
    %64 = vector.load %arg8[%c0_30, %c0_31] : memref<32x64xf32, #tpu.memory_space<vmem>>, vector<32x64xf32>
    tpu.vector_store %arg8[%c0_30, %c0_31], %63 {strides = array<i32>} : memref<32x64xf32, #tpu.memory_space<vmem>>, vector<32x64xf32>,
    return
  }
  func.func @transform_0(%arg0: i32) -> (i32, i32, i32) {
    %c0_i32 = arith.constant 0 : i32
    %c0_i32_0 = arith.constant 0 : i32
    %c0_i32_1 = arith.constant 0 : i32
    %c0_i32_2 = arith.constant 0 : i32
    return %c0_i32, %c0_i32_0, %c0_i32_1 : i32, i32, i32
  }
  func.func @transform_1(%arg0: i32) -> (i32, i32, i32) {
    %c0_i32 = arith.constant 0 : i32
    %c0_i32_0 = arith.constant 0 : i32
    %c0_i32_1 = arith.constant 0 : i32
    %c0_i32_2 = arith.constant 0 : i32
    return %c0_i32, %c0_i32_0, %c0_i32_1 : i32, i32, i32
  }
  func.func @transform_2(%arg0: i32) -> (i32, i32) {
    %c0_i32 = arith.constant 0 : i32
    %c0_i32_0 = arith.constant 0 : i32
    %c0_i32_1 = arith.constant 0 : i32
    return %c0_i32, %c0_i32_0 : i32, i32
  }
  func.func @transform_3(%arg0: i32) -> (i32, i32) {
    %c0_i32 = arith.constant 0 : i32
    %c0_i32_0 = arith.constant 0 : i32
    %c0_i32_1 = arith.constant 0 : i32
    return %c0_i32, %c0_i32_0 : i32, i32
  }
  func.func @transform_4(%arg0: i32) -> (i32, i32) {
    %c0_i32 = arith.constant 0 : i32
    %c0_i32_0 = arith.constant 0 : i32
    %c0_i32_1 = arith.constant 0 : i32
    return %c0_i32, %c0_i32_0 : i32, i32
  }
  func.func @transform_5(%arg0: i32) -> (i32, i32) {
    %c0_i32 = arith.constant 0 : i32
    %c0_i32_0 = arith.constant 0 : i32
    %c0_i32_1 = arith.constant 0 : i32
    return %c0_i32, %c0_i32_0 : i32, i32
  }
  func.func @transform_6(%arg0: i32) -> (i32, i32) {
    %c0_i32 = arith.constant 0 : i32
    %c0_i32_0 = arith.constant 0 : i32
    %c0_i32_1 = arith.constant 0 : i32
    return %c0_i32, %c0_i32_0 : i32, i32
  }
  func.func @transform_7(%arg0: i32) -> (i32, i32) {
    %c0_i32 = arith.constant 0 : i32
    %c0_i32_0 = arith.constant 0 : i32
    %c0_i32_1 = arith.constant 0 : i32
    return %c0_i32, %c0_i32_0 : i32, i32
  }
}

</mosaic_0001>

<bundles_post_ra>
// kernel: tpu_custom_call.1
= control target key start
LH: loop header
LB: loop body
LE: loop exit
PB: predicated region body
PF: predicated region fallthrough
CT: control target
= control target key end

     0   :  { %12 = vsyncpa [#allocation3], 0  ;;  %s3006_s0 = inlined_call_operand.vmem [shape: f32[5,32,32], index: 0, kind: input, shape index: {}]   ;;  %s3007_s1 = inlined_call_operand.vmem [shape: f32[5,32,16], index: 1, kind: input, shape index: {}]   ;;  %s3008_s2 = inlined_call_operand.vmem [shape: f32[16,32], index: 2, kind: input, shape index: {}]   ;;  %s3009_s3 = inlined_call_operand.vmem [shape: f32[32,32], index: 3, kind: input, shape index: {}]   ;;  %s3010_s4 = inlined_call_operand.vmem [shape: f32[32,32], index: 4, kind: input, shape index: {}]   ;;  %s3011_s5 = inlined_call_operand.hbm [shape: f32[32,32], index: 5, kind: input, shape index: {}]   ;;  %s3012_s6 = inlined_call_operand.vmem [shape: f32[1,32], index: 6, kind: input, shape index: {}]   ;;  %s3013_s7 = inlined_call_operand.hbm [shape: f32[32,64], index: 7, kind: output, shape index: {}]  }
   0x1   :  { %13 = vsyncpa [#allocation4], 0  ;;  %s28_s26 = sshll.u32 %s3011_s5, 4  ;;  %s2139_s27 = smov [#allocation2]   ;;  %s29_s26 = int_to_ptr.hbm [resolvable:$true] %s28_s26 }
   0x2   :  { %s30_s28 = sshll.u32 %s2139_s27, 4  ;;  %s2140_s29 = smov 128   ;;  %s31_s28 = int_to_ptr.vmem [resolvable:$true] %s30_s28 }
   0x3   :  { %s2141_s30 = smov 8  }
   0x4   :  { %36 = dma.hbm_to_vmem [thread:$0]  %s29_s26, 512, %s31_s28, [#allocation3], %s2140_s29, %s2140_s29, %s2141_s30  }
   0x5   :  { %2135 = dma.done.wait [#allocation3], 512  }
   0x6   :  { %2136 = vsyncadd [#allocation3], 4294966784  ;;  %v66_v0 = vld [vmem:[%s3007_s1 + $0x18] sm:$0xff]  ;;  %v65_v1 = vld [vmem:[%s3007_s1 + $0x10] sm:$0xff]  ;;  %vm85_vm0 = vcmask 261120   ;;  %vm291_vm1 = vcmask 130048  }
   0x7   :  { %110 = vmatpush.msra.mxu0 %v66_v0  ;;  %v64_v2 = vld [vmem:[%s3007_s1 + $0x8] sm:$0xff]  ;;  %v70_v3 = vld [vmem:[%s3007_s1 + $0x38] sm:$0xff]  ;;  %v69_v4 = vld [vmem:[%s3007_s1 + $0x30] sm:$0xff]  ;;  %s1804_s20 = sshll.u32 %s3013_s7, 4  ;;  %s1805_s20 = int_to_ptr.hbm [resolvable:$true] %s1804_s20 }
   0x8   :  { %151 = vmatpush.msra.mxu1 %v70_v3  ;;  %v63_v5 = vld [vmem:[%s3007_s1] sm:$0xff]  ;;  %v68_v6 = vld [vmem:[%s3007_s1 + $0x28] sm:$0xff]  ;;  %v74_v8 = vld [vmem:[%s3007_s1 + $0x58] sm:$0xff] }
   0x9   :  { %111 = vmatpush.msra.mxu0 %v65_v1  ;;  %v2214_v7 = vld [vmem:[%s3006_s0] sm:$0xff]  ;;  %1917 = vmatpush.msra.mxu2 %v74_v8  ;;  %v73_v11 = vld [vmem:[%s3007_s1 + $0x50] sm:$0xff]  ;;  %v72_v12 = vld [vmem:[%s3007_s1 + $0x48] sm:$0xff] }
   0xa   :  { %152 = vmatpush.msra.mxu1 %v69_v4  ;;  %v67_v9 = vld [vmem:[%s3007_s1 + $0x20] sm:$0xff]  ;;  %v2240_v13 = vld [vmem:[%s3006_s0 + $0x48] sm:$0xff]  ;;  %v78_v15 = vld [vmem:[%s3007_s1 + $0x78] sm:$0xff] }
   0xb   :  { %112 = vmatpush.msra.mxu0 %v64_v2  ;;  %v2225_v10 = vld [vmem:[%s3006_s0 + $0x20] sm:$0xff]  ;;  %1918 = vmatpush.msra.mxu2 %v73_v11  ;;  %v2251_v16 = vld [vmem:[%s3006_s0 + $0x8] sm:$0xff]  ;;  %v77_v17 = vld [vmem:[%s3007_s1 + $0x70] sm:$0xff] }
   0xc   :  { %153 = vmatpush.msra.mxu1 %v68_v6  ;;  %v71_v14 = vld [vmem:[%s3007_s1 + $0x40] sm:$0xff]  ;;  %1921 = vmatpush.msra.mxu3 %v78_v15  ;;  %v2261_v18 = vld [vmem:[%s3006_s0 + $0x28] sm:$0xff]  ;;  %v2276_v21 = vld [vmem:[%s3006_s0 + $0x50] sm:$0xff] }
   0xd   :  { %113 = vmatpush.msra.mxu0 %v63_v5  ;;  %1919 = vmatpush.msra.mxu2 %v72_v12  ;;  %v76_v19 = vld [vmem:[%s3007_s1 + $0x68] sm:$0xff]  ;;  %v75_v20 = vld [vmem:[%s3007_s1 + $0x60] sm:$0xff]  ;;  %v2281_v22 = vld [vmem:[%s3006_s0 + $0x10] sm:$0xff] }
   0xe   :  { %1817 = vmatmul.msk.f32.vlgmr.msra.gmra.mxu0 %vm85_vm0, %v2214_v7  ;;  %154 = vmatpush.msra.mxu1 %v67_v9  ;;  %v2288_v23 = vld [vmem:[%s3006_s0 + $0x78] sm:$0xff]  ;;  %v81_v25 = vld [vmem:[%s3007_s1 + $0x90] sm:$0xff]  ;;  %v84_v26 = vld [vmem:[%s3008_s2 + $0x8] sm:$0xff] }
   0xf   :  { %1821 = vmatmul.msk.f32.vlgmr.msra.gmra.mxu1 %vm85_vm0, %v2225_v10  ;;  %1920 = vmatpush.msra.mxu2 %v71_v14  ;;  %v82_v24 = vld [vmem:[%s3007_s1 + $0x98] sm:$0xff]  ;;  %v2304_v27 = vld [vmem:[%s3006_s0 + $0x30] sm:$0xff]  ;;  %v2334_v31 = vld [vmem:[%s3006_s0 + $0x60] sm:$0xff] }
  0x10   :  { %192 = vmatpush.msrb.mxu1 %v74_v8  ;;  %1826 = vmatmul.msk.f32.vlgmr.msra.gmra.mxu2 %vm85_vm0, %v2240_v13  ;;  %v2313_v28 = vld [vmem:[%s3006_s0 + $0x58] sm:$0xff]  ;;  %v2341_v32 = vld [vmem:[%s3006_s0 + $0x40] sm:$0xff]  ;;  %v2348_v33 = vld [vmem:[%s3006_s0 + $0x68] sm:$0xff] }
  0x11   :  { %233 = vmatpush.msrb.mxu2 %v78_v15  ;;  %1922 = vmatpush.msra.mxu3 %v77_v17  ;;  %v2318_v29 = vld [vmem:[%s3006_s0 + $0x18] sm:$0xff]  ;;  %v2355_v34 = vld [vmem:[%s3006_s0 + $0x70] sm:$0xff]  ;;  %v80_v35 = vld [vmem:[%s3007_s1 + $0x88] sm:$0xff] }
  0x12   :  { %193 = vmatpush.msrb.mxu1 %v73_v11  ;;  %274 = vmatpush.msrb.mxu0 %v82_v24  ;;  %v2325_v30 = vld [vmem:[%s3006_s0 + $0x38] sm:$0xff]  ;;  %v83_v36 = vld [vmem:[%s3008_s2] sm:$0xff]  ;;  %v2378_v39 = vld [vmem:[%s3006_s0 + $0x88] sm:$0xff] }
  0x13   :  { %234 = vmatpush.msrb.mxu2 %v77_v17  ;;  %1923 = vmatpush.msra.mxu3 %v76_v19  ;;  %v79_v37 = vld [vmem:[%s3007_s1 + $0x80] sm:$0xff]  ;;  %v2385_v40 = vld [vmem:[%s3006_s0 + $0x90] sm:$0xff]  ;;  %v2392_v41 = vld [vmem:[%s3006_s0 + $0x98] sm:$0xff] }
  0x14   :  { %194 = vmatpush.msrb.mxu1 %v72_v12  ;;  %275 = vmatpush.msrb.mxu0 %v81_v25  ;;  %v2371_v38 = vld [vmem:[%s3006_s0 + $0x80] sm:$0xff] }
  0x15   :  { %235 = vmatpush.msrb.mxu2 %v76_v19  ;;  %1924 = vmatpush.msra.mxu3 %v75_v20 }
  0x16   :  { %1818 = vmatmul.msk.f32.gmra.mxu0 %vm85_vm0, %v2251_v16  ;;  %195 = vmatpush.msrb.mxu1 %v71_v14 }
  0x17   :  { %1822 = vmatmul.msk.f32.gmra.mxu1 %vm85_vm0, %v2261_v18  ;;  %236 = vmatpush.msrb.mxu2 %v75_v20 }
  0x18   :  { %1827 = vmatmul.msk.f32.gmra.mxu2 %vm85_vm0, %v2276_v21  ;;  %1832 = vmatmul.msk.f32.vlgmr.msra.gmra.mxu3 %vm85_vm0, %v2288_v23 }
  0x19   :  { %366 = vmatpush.msra.mxu1 %v84_v26  ;;  %276 = vmatpush.msrb.mxu0 %v80_v35 }
  0x1b   :  { %367 = vmatpush.msra.mxu1 %v83_v36  ;;  %277 = vmatpush.msrb.mxu0 %v79_v37 }
  0x1e   :  { %1819 = vmatmul.msk.f32.gmra.mxu0 %vm85_vm0, %v2281_v22 }
  0x1f   :  { %1823 = vmatmul.msk.f32.gmra.mxu1 %vm85_vm0, %v2304_v27 }
  0x20   :  { %1828 = vmatmul.msk.f32.gmra.mxu2 %vm85_vm0, %v2313_v28 }
  0x26   :  { %1820 = vmatmul.msk.f32.gmra.mxu0 %vm85_vm0, %v2318_v29 }
  0x27   :  { %1824 = vmatmul.msk.f32.gmra.mxu1 %vm85_vm0, %v2325_v30 }
  0x28   :  { %1829 = vmatmul.msk.f32.vlgmr.msrb.gmra.mxu2 %vm85_vm0, %v2334_v31 }
  0x2e   :  { %1833 = vmatmul.msk.f32.vlgmr.msrb.gmra.mxu0 %vm85_vm0, %v2371_v38 }
  0x2f   :  { %1825 = vmatmul.msk.f32.vlgmr.msrb.gmra.mxu1 %vm85_vm0, %v2341_v32 }
  0x30   :  { %1830 = vmatmul.msk.f32.gmra.mxu2 %vm85_vm0, %v2348_v33 }
  0x36   :  { %1834 = vmatmul.msk.f32.gmra.mxu0 %vm85_vm0, %v2378_v39 }
  0x38   :  { %1831 = vmatmul.msk.f32.gmra.mxu2 %vm85_vm0, %v2355_v34 }
  0x3e   :  { %1835 = vmatmul.msk.f32.gmra.mxu0 %vm85_vm0, %v2385_v40 }
  0x46   :  { %1836 = vmatmul.msk.f32.gmra.mxu0 %vm85_vm0, %v2392_v41 }
  0x8b   :  { %v115_v42 = vpop.f32.mrf.mxu0 }
  0x8c   :  { %1837 = vmatmul.msk.f32.vlgmr.msra.gmra.mxu1 %vm291_vm1, %v115_v42  ;;  %v156_v45 = vpop.f32.mrf.mxu1 }
  0x93   :  { %v118_v43 = vpop.f32.mrf.mxu0  ;;  %v200_v50 = vpop.f32.mrf.mxu2 }
  0x94   :  { %1838 = vmatmul.msk.f32.gmra.mxu1 %vm291_vm1, %v118_v43  ;;  %v159_v47 = vpop.f32.mrf.mxu1 }
  0x9b   :  { %v121_v44 = vpop.f32.mrf.mxu0  ;;  %v203_v52 = vpop.f32.mrf.mxu2 }
  0x9c   :  { %1839 = vmatmul.msk.f32.gmra.mxu1 %vm291_vm1, %v121_v44  ;;  %v162_v48 = vpop.f32.mrf.mxu1  ;;  %v247_v57 = vpop.f32.mrf.mxu3 }
  0xa3   :  { %v124_v46 = vpop.f32.mrf.mxu0  ;;  %v206_v53 = vpop.f32.mrf.mxu2 }
  0xa4   :  { %1840 = vmatmul.msk.f32.gmra.mxu1 %vm291_vm1, %v124_v46  ;;  %v165_v49 = vpop.f32.mrf.mxu1 }
  0xab   :  { %v238_v54 = vpop.f32.mrf.mxu2  ;;  %v279_v58 = vpop.f32.mrf.mxu0 }
  0xac   :  { %1841 = vmatmul.msk.f32.gmra.mxu1 %vm291_vm1, %v156_v45  ;;  %v197_v51 = vpop.f32.mrf.mxu1 }
  0xb3   :  { %v241_v55 = vpop.f32.mrf.mxu2  ;;  %v282_v60 = vpop.f32.mrf.mxu0 }
  0xb4   :  { %1842 = vmatmul.msk.f32.gmra.mxu1 %vm291_vm1, %v159_v47 }
  0xbb   :  { %v244_v56 = vpop.f32.mrf.mxu2  ;;  %v285_v2 = vpop.f32.mrf.mxu0 }
  0xbc   :  { %1843 = vmatmul.msk.f32.gmra.mxu1 %vm291_vm1, %v162_v48 }
  0xc3   :  { %v288_v8 = vpop.f32.mrf.mxu0 }
  0xc4   :  { %1844 = vmatmul.msk.f32.gmra.mxu1 %vm291_vm1, %v165_v49 }
  0xcc   :  { %1845 = vmatmul.msk.f32.gmra.mxu1 %vm291_vm1, %v197_v51 }
  0xd4   :  { %1846 = vmatmul.msk.f32.gmra.mxu1 %vm291_vm1, %v200_v50 }
  0xdc   :  { %1847 = vmatmul.msk.f32.gmra.mxu1 %vm291_vm1, %v203_v52 }
  0xe4   :  { %1848 = vmatmul.msk.f32.gmra.mxu1 %vm291_vm1, %v206_v53 }
  0xec   :  { %1849 = vmatmul.msk.f32.gmra.mxu1 %vm291_vm1, %v238_v54 }
  0xf4   :  { %1850 = vmatmul.msk.f32.gmra.mxu1 %vm291_vm1, %v241_v55 }
  0xfc   :  { %1851 = vmatmul.msk.f32.gmra.mxu1 %vm291_vm1, %v244_v56 }
 0x104   :  { %1852 = vmatmul.msk.f32.gmra.mxu1 %vm291_vm1, %v247_v57 }
 0x109   :  { %v369_v59 = vpop.f32.mrf.mxu1 }
 0x10a   :  { %v2418_v0 = vmax.f32 %v369_v59, 0.0 }
 0x10c   :  { %1853 = vmatmul.msk.f32.gmra.mxu1 %vm291_vm1, %v279_v58  ;;  %v449_v4 = vmul.f32 %v2418_v0, %v2418_v0 }
 0x10e   :  { %v469_v5 = vsel %vm85_vm0, %v449_v4, 0.0 }
 0x111   :  { %v372_v61 = vpop.f32.mrf.mxu1 }
 0x112   :  { %v2413_v62 = vmax.f32 %v372_v61, 0.0 }
 0x114   :  { %1854 = vmatmul.msk.f32.gmra.mxu1 %vm291_vm1, %v282_v60  ;;  %v450_v63 = vmul.f32 %v2413_v62, %v2413_v62 }
 0x116   :  { %v472_v1 = vsel %vm85_vm0, %v450_v63, 0.0 }
 0x117   :  { %473 = vadd.xlane.f32.xlu1 %v472_v1 }
 0x119   :  { %v375_v3 = vpop.f32.mrf.mxu1 }
 0x11a   :  { %v2430_v12 = vmax.f32 %v375_v3, 0.0 }
 0x11c   :  { %1855 = vmatmul.msk.f32.gmra.mxu1 %vm291_vm1, %v285_v2  ;;  %v451_v19 = vmul.f32 %v2430_v12, %v2430_v12 }
 0x11e   :  { %v475_v24 = vsel %vm85_vm0, %v451_v19, 0.0 }
 0x11f   :  { %470 = vadd.xlane.f32.xlu1 %v469_v5 }
 0x121   :  { %v378_v6 = vpop.f32.mrf.mxu1 }
 0x122   :  { %v2425_v9 = vmax.f32 %v378_v6, 0.0 }
 0x124   :  { %1856 = vmatmul.msk.f32.gmra.mxu1 %vm291_vm1, %v288_v8  ;;  %v452_v11 = vmul.f32 %v2425_v9, %v2425_v9 }
 0x126   :  { %v478_v14 = vsel %vm85_vm0, %v452_v11, 0.0 }
 0x127   :  { %479 = vadd.xlane.f32.xlu0 %v478_v14 }
 0x129   :  { %v381_v15 = vpop.f32.mrf.mxu1 }
 0x12a   :  { %v2433_v17 = vmax.f32 %v381_v15, 0.0 }
 0x12c   :  { %v453_v20 = vmul.f32 %v2433_v17, %v2433_v17 }
 0x12e   :  { %v481_v25 = vsel %vm85_vm0, %v453_v20, 0.0 }
 0x12f   :  { %476 = vadd.xlane.f32.xlu0 %v475_v24  ;;  %482 = vadd.xlane.f32.xlu1 %v481_v25 }
 0x131   :  { %v384_v26 = vpop.f32.mrf.mxu1 }
 0x132   :  { %v2441_v35 = vmax.f32 %v384_v26, 0.0 }
 0x134   :  { %v454_v36 = vmul.f32 %v2441_v35, %v2441_v35 }
 0x136   :  { %v484_v37 = vsel %vm85_vm0, %v454_v36, 0.0 }
 0x137   :  { %485 = vadd.xlane.f32.xlu0 %v484_v37 }
 0x139   :  { %v387_v42 = vpop.f32.mrf.mxu1 }
 0x13a   :  { %v2450_v46 = vmax.f32 %v387_v42, 0.0 }
 0x13c   :  { %v455_v49 = vmul.f32 %v2450_v46, %v2450_v46 }
 0x13e   :  { %v487_v50 = vsel %vm85_vm0, %v455_v49, 0.0 }
 0x141   :  { %v390_v43 = vpop.f32.mrf.mxu1 }
 0x142   :  { %v2446_v44 = vmax.f32 %v390_v43, 0.0 }
 0x144   :  { %v456_v45 = vmul.f32 %v2446_v44, %v2446_v44 }
 0x146   :  { %v490_v47 = vsel %vm85_vm0, %v456_v45, 0.0 }
 0x147   :  { %491 = vadd.xlane.f32.xlu2 %v490_v47 }
 0x149   :  { %v393_v48 = vpop.f32.mrf.mxu1 }
 0x14a   :  { %v2470_v63 = vmax.f32 %v393_v48, 0.0 }
 0x14c   :  { %v457_v3 = vmul.f32 %v2470_v63, %v2470_v63 }
 0x14e   :  { %v493_v4 = vsel %vm85_vm0, %v457_v3, 0.0 }
 0x14f   :  { %488 = vadd.xlane.f32.xlu2 %v487_v50 }
 0x151   :  { %v396_v51 = vpop.f32.mrf.mxu1 }
 0x152   :  { %v2456_v52 = vmax.f32 %v396_v51, 0.0 }
 0x154   :  { %v458_v53 = vmul.f32 %v2456_v52, %v2456_v52 }
 0x156   :  { %v496_v54 = vsel %vm85_vm0, %v458_v53, 0.0 }
 0x157   :  { %497 = vadd.xlane.f32.xlu1 %v496_v54 }
 0x159   :  { %v399_v55 = vpop.f32.mrf.mxu1 }
 0x15a   :  { %v2461_v56 = vmax.f32 %v399_v55, 0.0 }
 0x15c   :  { %v459_v57 = vmul.f32 %v2461_v56, %v2461_v56 }
 0x15e   :  { %v499_v58 = vsel %vm85_vm0, %v459_v57, 0.0 }
 0x15f   :  { %500 = vadd.xlane.f32.xlu0 %v499_v58 }
 0x161   :  { %v402_v59 = vpop.f32.mrf.mxu1 }
 0x162   :  { %v2466_v60 = vmax.f32 %v402_v59, 0.0 }
 0x164   :  { %v460_v61 = vmul.f32 %v2466_v60, %v2466_v60 }
 0x166   :  { %v502_v1 = vsel %vm85_vm0, %v460_v61, 0.0 }
 0x167   :  { %503 = vadd.xlane.f32.xlu2 %v502_v1 }
 0x169   :  { %v405_v2 = vpop.f32.mrf.mxu1 }
 0x16a   :  { %v2490_v36 = vmax.f32 %v405_v2, 0.0 }
 0x16c   :  { %v461_v45 = vmul.f32 %v2490_v36, %v2490_v36 }
 0x16e   :  { %v505_v47 = vsel %vm85_vm0, %v461_v45, 0.0 }
 0x16f   :  { %494 = vadd.xlane.f32.xlu2 %v493_v4 }
 0x171   :  { %v408_v5 = vpop.f32.mrf.mxu1 }
 0x172   :  { %v2476_v6 = vmax.f32 %v408_v5, 0.0 }
 0x174   :  { %v462_v8 = vmul.f32 %v2476_v6, %v2476_v6 }
 0x176   :  { %v508_v11 = vsel %vm85_vm0, %v462_v8, 0.0 }
 0x177   :  { %509 = vadd.xlane.f32.xlu2 %v508_v11 }
 0x179   :  { %v411_v14 = vpop.f32.mrf.mxu1 }
 0x17a   :  { %v2481_v15 = vmax.f32 %v411_v14, 0.0 }
 0x17c   :  { %v463_v19 = vmul.f32 %v2481_v15, %v2481_v15 }
 0x17e   :  { %v511_v20 = vsel %vm85_vm0, %v463_v19, 0.0 }
 0x17f   :  { %512 = vadd.xlane.f32.xlu1 %v511_v20 }
 0x181   :  { %v414_v24 = vpop.f32.mrf.mxu1 }
 0x182   :  { %v2486_v25 = vmax.f32 %v414_v24, 0.0 }
 0x184   :  { %v464_v26 = vmul.f32 %v2486_v25, %v2486_v25 }
 0x186   :  { %v514_v37 = vsel %vm85_vm0, %v464_v26, 0.0 }
 0x187   :  { %515 = vadd.xlane.f32.xlu0 %v514_v37 }
 0x189   :  { %v417_v42 = vpop.f32.mrf.mxu1 }
 0x18a   :  { %v474_v43 = vpop.xlane.xlu1 %473 }
 0x18b   :  { %v530_v53 = vmax.f32 %v474_v43, 1e-24  ;;  %v2520_v43 = vmax.f32 %v417_v42, 0.0 }
 0x18d   :  { %1935 = vrsqrt.f32 %v530_v53  ;;  %vm565_vm7 = vweird.f32 %v530_v53 }
 0x18f   :  { %506 = vadd.xlane.f32.xlu0 %v505_v47 }
 0x191   :  { %v420_v48 = vpop.f32.mrf.mxu1 }
 0x192   :  { %v2496_v49 = vmax.f32 %v420_v48, 0.0  ;;  %v471_v50 = vpop.xlane.xlu1 %470 }
 0x193   :  { %v2501_v55 = vmax.f32 %v471_v50, 1e-24  ;;  %v2509_v3 = vpop.eup %1935 }
 0x194   :  { %v466_v51 = vmul.f32 %v2496_v49, %v2496_v49  ;;  %v560_v8 = vmul.f32 %v2509_v3, %v530_v53  ;;  %vm566_vm5 = vweird.f32 %v2509_v3 }
 0x195   :  { %1937 = vrsqrt.f32 %v2501_v55  ;;  %vm2531_vm8 = vmor %vm565_vm7, %vm566_vm5  ;;  %vm555_vm12 = vweird.f32 %v2501_v55 }
 0x196   :  { %v520_v54 = vsel %vm85_vm0, %v466_v51, 0.0  ;;  %v561_v45 = vmul.f32 %v2509_v3, %v560_v8 }
 0x197   :  { %521 = vadd.xlane.f32.xlu0 %v520_v54 }
 0x198   :  { %v562_v54 = vmul.f32 0.5, %v561_v45 }
 0x199   :  { %v423_v57 = vpop.f32.mrf.mxu1 }
 0x19a   :  { %v2503_v58 = vmax.f32 %v423_v57, 0.0  ;;  %v480_v59 = vpop.xlane.xlu0 %479  ;;  %v563_v8 = vsub.f32 1.5, %v562_v54 }
 0x19b   :  { %v532_v61 = vmax.f32 %v480_v59, 1e-24  ;;  %v2511_v4 = vpop.eup %1937  ;;  %v465_v59 = vmul.f32 %v2520_v43, %v2520_v43 }
 0x19c   :  { %v467_v1 = vmul.f32 %v2503_v58, %v2503_v58  ;;  %v550_v24 = vmul.f32 %v2511_v4, %v2501_v55  ;;  %vm556_vm9 = vweird.f32 %v2511_v4 }
 0x19d   :  { %1939 = vrsqrt.f32 %v532_v61  ;;  %vm585_vm3 = vweird.f32 %v532_v61  ;;  %vm557_vm13 = vmor %vm555_vm12, %vm556_vm9 }
 0x19e   :  { %v523_v2 = vsel %vm85_vm0, %v467_v1, 0.0  ;;  %v551_v50 = vmul.f32 %v2511_v4, %v550_v24 }
 0x19f   :  { %524 = vadd.xlane.f32.xlu2 %v523_v2 }
 0x1a0   :  { %v552_v2 = vmul.f32 0.5, %v551_v50 }
 0x1a1   :  { %v426_v5 = vpop.f32.mrf.mxu1 }
 0x1a2   :  { %v2514_v11 = vmax.f32 %v426_v5, 0.0  ;;  %v477_v14 = vpop.xlane.xlu0 %476  ;;  %v553_v45 = vsub.f32 1.5, %v552_v2 }
 0x1a3   :  { %v1940_v19 = vpop.eup %1939  ;;  %v531_v20 = vmax.f32 %v477_v14, 1e-24 }
 0x1a4   :  { %v580_v26 = vmul.f32 %v1940_v19, %v532_v61  ;;  %v468_v37 = vmul.f32 %v2514_v11, %v2514_v11  ;;  %vm586_vm2 = vweird.f32 %v1940_v19  ;;  %v564_v61 = vmul.f32 %v2509_v3, %v563_v8 }
 0x1a5   :  { %1941 = vrsqrt.f32 %v531_v20  ;;  %vm587_vm4 = vmor %vm585_vm3, %vm586_vm2  ;;  %vm575_vm10 = vweird.f32 %v531_v20  ;;  %v554_v54 = vmul.f32 %v2511_v4, %v553_v45 }
 0x1a6   :  { %v581_v47 = vmul.f32 %v1940_v19, %v580_v26  ;;  %v526_v48 = vsel %vm85_vm0, %v468_v37, 0.0  ;;  %v517_v37 = vsel %vm85_vm0, %v465_v59, 0.0  ;;  %v568_v53 = vsel %vm2531_vm8, %v2509_v3, %v564_v61 }
 0x1a7   :  { %527 = vadd.xlane.f32.xlu1 %v526_v48 }
 0x1a8   :  { %v582_v51 = vmul.f32 0.5, %v581_v47 }
 0x1aa   :  { %v583_v57 = vsub.f32 1.5, %v582_v51  ;;  %v486_v50 = vpop.xlane.xlu0 %485 }
 0x1ab   :  { %v1942_v1 = vpop.eup %1941 }
 0x1ac   :  { %v584_v5 = vmul.f32 %v1940_v19, %v583_v57  ;;  %v570_v42 = vmul.f32 %v1942_v1, %v531_v20  ;;  %vm576_vm6 = vweird.f32 %v1942_v1  ;;  %v534_v57 = vmax.f32 %v486_v50, 1e-24 }
 0x1ad   :  { %vm577_vm11 = vmor %vm575_vm10, %vm576_vm6  ;;  %v558_v20 = vsel %vm557_vm13, %v2511_v4, %v554_v54 }
 0x1ae   :  { %v588_v14 = vsel %vm587_vm4, %v1940_v19, %v584_v5  ;;  %v571_v26 = vmul.f32 %v1942_v1, %v570_v42  ;;  %v483_v19 = vpop.xlane.xlu1 %482  ;;  %1943 = vrsqrt.f32 %v534_v57  ;;  %v750_v42 = vmul.f32 %v568_v53, %v2413_v62 }
 0x1af   :  { %518 = vadd.xlane.f32.xlu1 %v517_v37  ;;  %v752_v24 = vmul.f32 %v588_v14, %v2425_v9  ;;  %v2541_v2 = vmax.f32 %v483_v19, 1e-24  ;;  %vm605_vm4 = vweird.f32 %v534_v57 }
 0x1b0   :  { %v572_v47 = vmul.f32 0.5, %v571_v26 }
 0x1b1   :  { %785 = vmatpush.msra.mxu2 %v752_v24  ;;  %1945 = vrsqrt.f32 %v2541_v2  ;;  %vm595_vm9 = vweird.f32 %v2541_v2 }
 0x1b2   :  { %v573_v48 = vsub.f32 1.5, %v572_v47 }
 0x1b4   :  { %v574_v9 = vmul.f32 %v1942_v1, %v573_v48  ;;  %v1944_v3 = vpop.eup %1943 }
 0x1b5   :  { %v600_v14 = vmul.f32 %v1944_v3, %v534_v57  ;;  %vm606_vm2 = vweird.f32 %v1944_v3 }
 0x1b6   :  { %v578_v59 = vsel %vm577_vm11, %v1942_v1, %v574_v9  ;;  %v749_v1 = vmul.f32 %v558_v20, %v2418_v0  ;;  %vm607_vm6 = vmor %vm605_vm4, %vm606_vm2 }
 0x1b7   :  { %v751_v5 = vmul.f32 %v578_v59, %v2430_v12  ;;  %v1946_v12 = vpop.eup %1945  ;;  %v601_v45 = vmul.f32 %v1944_v3, %v600_v14 }
 0x1b8   :  { %v590_v62 = vmul.f32 %v1946_v12, %v2541_v2  ;;  %vm596_vm7 = vweird.f32 %v1946_v12 }
 0x1b9   :  { %786 = vmatpush.msra.mxu2 %v751_v5  ;;  %v602_v50 = vmul.f32 0.5, %v601_v45  ;;  %vm597_vm10 = vmor %vm595_vm9, %vm596_vm7 }
 0x1ba   :  { %v492_v8 = vpop.xlane.xlu2 %491  ;;  %v591_v0 = vmul.f32 %v1946_v12, %v590_v62 }
 0x1bb   :  { %v536_v55 = vmax.f32 %v492_v8, 1e-24  ;;  %787 = vmatpush.msra.mxu2 %v750_v42  ;;  %v603_v59 = vsub.f32 1.5, %v602_v50 }
 0x1bc   :  { %v592_v51 = vmul.f32 0.5, %v591_v0 }
 0x1bd   :  { %1947 = vrsqrt.f32 %v536_v55  ;;  %788 = vmatpush.msra.mxu2 %v749_v1  ;;  %vm625_vm15 = vweird.f32 %v536_v55  ;;  %v604_v14 = vmul.f32 %v1944_v3, %v603_v59 }
 0x1be   :  { %1857 = vmatmul.msk.f32.vlgmr.msra.gmra.mxu2 %vm85_vm0, %v2214_v7  ;;  %v593_v42 = vsub.f32 1.5, %v592_v51 }
 0x1c2   :  { %v489_v4 = vpop.xlane.xlu2 %488 }
 0x1c3   :  { %v1948_v26 = vpop.eup %1947  ;;  %v535_v37 = vmax.f32 %v489_v4, 1e-24 }
 0x1c4   :  { %v620_v24 = vmul.f32 %v1948_v26, %v536_v55  ;;  %vm626_vm14 = vweird.f32 %v1948_v26 }
 0x1c5   :  { %1949 = vrsqrt.f32 %v535_v37  ;;  %vm627_vm1 = vmor %vm625_vm15, %vm626_vm14  ;;  %vm615_vm5 = vweird.f32 %v535_v37 }
 0x1c6   :  { %v621_v47 = vmul.f32 %v1948_v26, %v620_v24  ;;  %1858 = vmatmul.msk.f32.gmra.mxu2 %vm85_vm0, %v2251_v16 }
 0x1c8   :  { %v622_v48 = vmul.f32 0.5, %v621_v47 }
 0x1ca   :  { %v623_v61 = vsub.f32 1.5, %v622_v48  ;;  %v498_v9 = vpop.xlane.xlu1 %497 }
 0x1cb   :  { %v1950_v7 = vpop.eup %1949  ;;  %v2555_v20 = vmax.f32 %v498_v9, 1e-24 }
 0x1cc   :  { %v610_v19 = vmul.f32 %v1950_v7, %v535_v37  ;;  %v624_v54 = vmul.f32 %v1948_v26, %v623_v61  ;;  %vm616_vm3 = vweird.f32 %v1950_v7 }
 0x1cd   :  { %1951 = vrsqrt.f32 %v2555_v20  ;;  %vm617_vm8 = vmor %vm615_vm5, %vm616_vm3  ;;  %vm645_vm3 = vweird.f32 %v2555_v20 }
 0x1ce   :  { %v611_v53 = vmul.f32 %v1950_v7, %v610_v19  ;;  %1859 = vmatmul.msk.f32.gmra.mxu2 %vm85_vm0, %v2281_v22  ;;  %v628_v5 = vsel %vm627_vm1, %v1948_v26, %v624_v54  ;;  %v594_v22 = vmul.f32 %v1946_v12, %v593_v42  ;;  %v608_v26 = vsel %vm607_vm6, %v1944_v3, %v604_v14 }
 0x1cf   :  { %v756_v16 = vmul.f32 %v628_v5, %v2446_v44  ;;  %v754_v37 = vmul.f32 %v608_v26, %v2441_v35 }
 0x1d0   :  { %v612_v8 = vmul.f32 0.5, %v611_v53  ;;  %v598_v57 = vsel %vm597_vm10, %v1946_v12, %v594_v22 }
 0x1d1   :  { %814 = vmatpush.msrb.mxu3 %v756_v16  ;;  %v753_v50 = vmul.f32 %v598_v57, %v2433_v17 }
 0x1d2   :  { %v613_v1 = vsub.f32 1.5, %v612_v8  ;;  %v501_v55 = vpop.xlane.xlu0 %500 }
 0x1d3   :  { %v539_v4 = vmax.f32 %v501_v55, 1e-24  ;;  %v1952_v45 = vpop.eup %1951 }
 0x1d4   :  { %v614_v62 = vmul.f32 %v1950_v7, %v613_v1  ;;  %v640_v2 = vmul.f32 %v1952_v45, %v2555_v20  ;;  %vm646_vm13 = vweird.f32 %v1952_v45 }
 0x1d5   :  { %1953 = vrsqrt.f32 %v539_v4  ;;  %vm655_vm14 = vweird.f32 %v539_v4  ;;  %vm647_vm4 = vmor %vm645_vm3, %vm646_vm13 }
 0x1d6   :  { %1860 = vmatmul.msk.f32.gmra.mxu2 %vm85_vm0, %v2318_v29  ;;  %v618_v44 = vsel %vm617_vm8, %v1950_v7, %v614_v62 }
 0x1d7   :  { %v755_v24 = vmul.f32 %v618_v44, %v2450_v46  ;;  %v641_v46 = vmul.f32 %v1952_v45, %v640_v2 }
 0x1d9   :  { %815 = vmatpush.msrb.mxu3 %v755_v24  ;;  %v642_v51 = vmul.f32 0.5, %v641_v46 }
 0x1da   :  { %v504_v47 = vpop.xlane.xlu2 %503 }
 0x1db   :  { %v1954_v0 = vpop.eup %1953  ;;  %v540_v48 = vmax.f32 %v504_v47, 1e-24  ;;  %816 = vmatpush.msrb.mxu3 %v754_v37  ;;  %v643_v17 = vsub.f32 1.5, %v642_v51 }
 0x1dc   :  { %v650_v61 = vmul.f32 %v1954_v0, %v539_v4  ;;  %vm656_vm11 = vweird.f32 %v1954_v0 }
 0x1dd   :  { %1955 = vrsqrt.f32 %v540_v48  ;;  %817 = vmatpush.msrb.mxu3 %v753_v50  ;;  %vm2570_vm15 = vmor %vm655_vm14, %vm656_vm11  ;;  %vm665_vm1 = vweird.f32 %v540_v48  ;;  %v644_v55 = vmul.f32 %v1952_v45, %v643_v17 }
 0x1de   :  { %v651_v29 = vmul.f32 %v1954_v0, %v650_v61  ;;  %1861 = vmatmul.msk.f32.vlgmr.msrb.gmra.mxu3 %vm85_vm0, %v2225_v10 }
 0x1df   :  { %v648_v26 = vsel %vm647_vm4, %v1952_v45, %v644_v55 }
 0x1e0   :  { %v652_v3 = vmul.f32 0.5, %v651_v29 }
 0x1e2   :  { %v495_v12 = vpop.xlane.xlu2 %494  ;;  %v653_v9 = vsub.f32 1.5, %v652_v3 }
 0x1e3   :  { %v1956_v7 = vpop.eup %1955  ;;  %v537_v35 = vmax.f32 %v495_v12, 1e-24 }
 0x1e4   :  { %v660_v19 = vmul.f32 %v1956_v7, %v540_v48  ;;  %vm666_vm12 = vweird.f32 %v1956_v7  ;;  %v654_v5 = vmul.f32 %v1954_v0, %v653_v9 }
 0x1e5   :  { %1957 = vrsqrt.f32 %v537_v35  ;;  %vm667_vm2 = vmor %vm665_vm1, %vm666_vm12  ;;  %vm635_vm6 = vweird.f32 %v537_v35 }
 0x1e6   :  { %v661_v54 = vmul.f32 %v1956_v7, %v660_v19  ;;  %1862 = vmatmul.msk.f32.gmra.mxu3 %vm85_vm0, %v2261_v18  ;;  %v658_v4 = vsel %vm2570_vm15, %v1954_v0, %v654_v5 }
 0x1e7   :  { %v759_v24 = vmul.f32 %v658_v4, %v2461_v56 }
 0x1e8   :  { %v662_v59 = vmul.f32 0.5, %v661_v54 }
 0x1ea   :  { %v663_v53 = vsub.f32 1.5, %v662_v59  ;;  %v510_v1 = vpop.xlane.xlu2 %509 }
 0x1eb   :  { %v1958_v10 = vpop.eup %1957  ;;  %v2579_v62 = vmax.f32 %v510_v1, 1e-24 }
 0x1ec   :  { %v664_v42 = vmul.f32 %v1956_v7, %v663_v53  ;;  %v630_v8 = vmul.f32 %v1958_v10, %v537_v35  ;;  %vm636_vm5 = vweird.f32 %v1958_v10 }
 0x1ed   :  { %1959 = vrsqrt.f32 %v2579_v62  ;;  %vm637_vm7 = vmor %vm635_vm6, %vm636_vm5  ;;  %vm685_vm15 = vweird.f32 %v2579_v62 }
 0x1ee   :  { %v668_v18 = vsel %vm667_vm2, %v1956_v7, %v664_v42  ;;  %v631_v14 = vmul.f32 %v1958_v10, %v630_v8  ;;  %1863 = vmatmul.msk.f32.gmra.mxu3 %vm85_vm0, %v2304_v27  ;;  %v758_v27 = vmul.f32 %v648_v26, %v2456_v52 }
 0x1ef   :  { %v760_v22 = vmul.f32 %v668_v18, %v2466_v60 }
 0x1f0   :  { %v632_v44 = vmul.f32 0.5, %v631_v14 }
 0x1f1   :  { %843 = vmatpush.msra.mxu0 %v760_v22 }
 0x1f2   :  { %v633_v57 = vsub.f32 1.5, %v632_v44  ;;  %v513_v20 = vpop.xlane.xlu1 %512 }
 0x1f3   :  { %v543_v37 = vmax.f32 %v513_v20, 1e-24  ;;  %844 = vmatpush.msra.mxu0 %v759_v24  ;;  %v1960_v45 = vpop.eup %1959 }
 0x1f4   :  { %v634_v47 = vmul.f32 %v1958_v10, %v633_v57  ;;  %v680_v52 = vmul.f32 %v1960_v45, %v2579_v62  ;;  %vm686_vm10 = vweird.f32 %v1960_v45  ;;  %v772_v57 = vld [vmem:[%s3009_s3 + $0x18] sm:$0xff] }
 0x1f5   :  { %1961 = vrsqrt.f32 %v543_v37  ;;  %845 = vmatpush.msra.mxu0 %v758_v27  ;;  %vm695_vm11 = vweird.f32 %v543_v37  ;;  %vm687_vm1 = vmor %vm685_vm15, %vm686_vm10 }
 0x1f6   :  { %1864 = vmatmul.msk.f32.gmra.mxu3 %vm85_vm0, %v2325_v30  ;;  %v638_v60 = vsel %vm637_vm7, %v1958_v10, %v634_v47  ;;  %v681_v29 = vmul.f32 %v1960_v45, %v680_v52 }
 0x1f7   :  { %v757_v56 = vmul.f32 %v638_v60, %v2470_v63 }
 0x1f8   :  { %v682_v12 = vmul.f32 0.5, %v681_v29 }
 0x1f9   :  { %846 = vmatpush.msra.mxu0 %v757_v56  ;;  %v769_v56 = vld [vmem:[%s3009_s3] sm:$0xff] }
 0x1fa   :  { %v516_v0 = vpop.xlane.xlu0 %515  ;;  %1865 = vmatmul.msk.f32.vlgmr.msra.gmra.mxu0 %vm85_vm0, %v2341_v32  ;;  %v683_v51 = vsub.f32 1.5, %v682_v12 }
 0x1fb   :  { %v1962_v48 = vpop.eup %1961  ;;  %v544_v50 = vmax.f32 %v516_v0, 1e-24  ;;  %990 = vmatpush.msrb.mxu0 %v772_v57 }
 0x1fc   :  { %v690_v2 = vmul.f32 %v1962_v48, %v543_v37  ;;  %vm696_vm8 = vweird.f32 %v1962_v48  ;;  %v684_v10 = vmul.f32 %v1960_v45, %v683_v51 }
 0x1fd   :  { %1963 = vrsqrt.f32 %v544_v50  ;;  %vm2595_vm12 = vmor %vm695_vm11, %vm696_vm8  ;;  %vm705_vm13 = vweird.f32 %v544_v50 }
 0x1fe   :  { %v691_v61 = vmul.f32 %v1962_v48, %v690_v2  ;;  %v688_v18 = vsel %vm687_vm1, %v1960_v45, %v684_v10 }
 0x1ff   :  { %v762_v44 = vmul.f32 %v688_v18, %v2476_v6  ;;  %v771_v6 = vld [vmem:[%s3009_s3 + $0x10] sm:$0xff] }
 0x200   :  { %v692_v46 = vmul.f32 0.5, %v691_v61  ;;  %991 = vmatpush.msrb.mxu0 %v771_v6 }
 0x202   :  { %v507_v3 = vpop.xlane.xlu0 %506  ;;  %1866 = vmatmul.msk.f32.gmra.mxu0 %vm85_vm0, %v2240_v13  ;;  %v693_v35 = vsub.f32 1.5, %v692_v46 }
 0x203   :  { %v1964_v30 = vpop.eup %1963  ;;  %v541_v63 = vmax.f32 %v507_v3, 1e-24 }
 0x204   :  { %v700_v7 = vmul.f32 %v1964_v30, %v544_v50  ;;  %vm706_vm9 = vweird.f32 %v1964_v30  ;;  %v694_v54 = vmul.f32 %v1962_v48, %v693_v35 }
 0x205   :  { %1965 = vrsqrt.f32 %v541_v63  ;;  %vm707_vm14 = vmor %vm705_vm13, %vm706_vm9  ;;  %vm675_vm3 = vweird.f32 %v541_v63 }
 0x206   :  { %v701_v32 = vmul.f32 %v1964_v30, %v700_v7 }
 0x208   :  { %v702_v19 = vmul.f32 0.5, %v701_v32 }
 0x20a   :  { %v703_v9 = vsub.f32 1.5, %v702_v19  ;;  %1867 = vmatmul.msk.f32.gmra.mxu0 %vm85_vm0, %v2276_v21  ;;  %v522_v5 = vpop.xlane.xlu0 %521  ;;  %v698_v21 = vsel %vm2595_vm12, %v1962_v48, %v694_v54 }
 0x20b   :  { %v1966_v17 = vpop.eup %1965  ;;  %v2602_v8 = vmax.f32 %v522_v5, 1e-24  ;;  %v763_v14 = vmul.f32 %v698_v21, %v2481_v15 }
 0x20c   :  { %v704_v59 = vmul.f32 %v1964_v30, %v703_v9  ;;  %v670_v53 = vmul.f32 %v1966_v17, %v541_v63  ;;  %vm676_vm2 = vweird.f32 %v1966_v17 }
 0x20d   :  { %1967 = vrsqrt.f32 %v2602_v8  ;;  %vm677_vm4 = vmor %vm675_vm3, %vm676_vm2  ;;  %vm725_vm12 = vweird.f32 %v2602_v8 }
 0x20e   :  { %v708_v16 = vsel %vm707_vm14, %v1964_v30, %v704_v59  ;;  %v671_v42 = vmul.f32 %v1966_v17, %v670_v53 }
 0x20f   :  { %v764_v1 = vmul.f32 %v708_v16, %v2486_v25 }
 0x210   :  { %v672_v55 = vmul.f32 0.5, %v671_v42 }
 0x211   :  { %872 = vmatpush.msrb.mxu2 %v764_v1 }
 0x212   :  { %v673_v4 = vsub.f32 1.5, %v672_v55  ;;  %v525_v22 = vpop.xlane.xlu2 %524  ;;  %1868 = vmatmul.msk.f32.gmra.mxu0 %vm85_vm0, %v2313_v28 }
 0x213   :  { %v547_v62 = vmax.f32 %v525_v22, 1e-24  ;;  %873 = vmatpush.msrb.mxu2 %v763_v14  ;;  %v2611_v24 = vpop.eup %1967 }
 0x214   :  { %v674_v26 = vmul.f32 %v1966_v17, %v673_v4  ;;  %vm726_vm7 = vweird.f32 %v2611_v24 }
 0x215   :  { %1969 = vrsqrt.f32 %v547_v62  ;;  %874 = vmatpush.msrb.mxu2 %v762_v44  ;;  %vm735_vm8 = vweird.f32 %v547_v62  ;;  %vm727_vm13 = vmor %vm725_vm12, %vm726_vm7 }
 0x216   :  { %v678_v25 = vsel %vm677_vm4, %v1966_v17, %v674_v26 }
 0x217   :  { %v761_v15 = vmul.f32 %v678_v25, %v2490_v36  ;;  %v720_v36 = vmul.f32 %v2611_v24, %v2602_v8 }
 0x219   :  { %875 = vmatpush.msrb.mxu2 %v761_v15  ;;  %v721_v60 = vmul.f32 %v2611_v24, %v720_v36 }
 0x21a   :  { %1869 = vmatmul.msk.f32.vlgmr.msrb.gmra.mxu2 %vm85_vm0, %v2334_v31  ;;  %v528_v28 = vpop.xlane.xlu1 %527  ;;  %v770_v31 = vld [vmem:[%s3009_s3 + $0x8] sm:$0xff] }
 0x21b   :  { %v1970_v20 = vpop.eup %1969  ;;  %v548_v37 = vmax.f32 %v528_v28, 1e-24  ;;  %1925 = vmatpush.msra.mxu2 %v772_v57  ;;  %992 = vmatpush.msrb.mxu0 %v770_v31  ;;  %v722_v52 = vmul.f32 0.5, %v721_v60 }
 0x21c   :  { %v730_v27 = vmul.f32 %v1970_v20, %v547_v62  ;;  %vm736_vm5 = vweird.f32 %v1970_v20 }
 0x21d   :  { %1971 = vrsqrt.f32 %v548_v37  ;;  %1926 = vmatpush.msra.mxu2 %v771_v6  ;;  %993 = vmatpush.msrb.mxu0 %v769_v56  ;;  %v723_v46 = vsub.f32 1.5, %v722_v52  ;;  %vm737_vm9 = vmor %vm735_vm8, %vm736_vm5  ;;  %vm745_vm10 = vweird.f32 %v548_v37 }
 0x21e   :  { %v731_v47 = vmul.f32 %v1970_v20, %v730_v27 }
 0x21f   :  { %1927 = vmatpush.msra.mxu2 %v770_v31  ;;  %v724_v35 = vmul.f32 %v2611_v24, %v723_v46 }
 0x220   :  { %v732_v45 = vmul.f32 0.5, %v731_v47 }
 0x221   :  { %1928 = vmatpush.msra.mxu2 %v769_v56  ;;  %v728_v54 = vsel %vm727_vm13, %v2611_v24, %v724_v35 }
 0x222   :  { %1870 = vmatmul.msk.f32.gmra.mxu2 %vm85_vm0, %v2348_v33  ;;  %v519_v0 = vpop.xlane.xlu1 %518  ;;  %v733_v61 = vsub.f32 1.5, %v732_v45  ;;  %v766_v59 = vmul.f32 %v728_v54, %v2496_v49 }
 0x223   :  { %v1972_v48 = vpop.eup %1971  ;;  %v545_v50 = vmax.f32 %v519_v0, 1e-24 }
 0x224   :  { %v740_v2 = vmul.f32 %v1972_v48, %v548_v37  ;;  %vm746_vm6 = vweird.f32 %v1972_v48  ;;  %v734_v63 = vmul.f32 %v1970_v20, %v733_v61 }
 0x225   :  { %1973 = vrsqrt.f32 %v545_v50  ;;  %vm747_vm11 = vmor %vm745_vm10, %vm746_vm6  ;;  %vm715_vm15 = vweird.f32 %v545_v50 }
 0x226   :  { %v741_v29 = vmul.f32 %v1972_v48, %v740_v2  ;;  %v738_v19 = vsel %vm737_vm9, %v1970_v20, %v734_v63 }
 0x227   :  { %v767_v17 = vmul.f32 %v738_v19, %v2503_v58 }
 0x228   :  { %v742_v3 = vmul.f32 0.5, %v741_v29 }
 0x22a   :  { %v743_v30 = vsub.f32 1.5, %v742_v3  ;;  %1871 = vmatmul.msk.f32.gmra.mxu2 %vm85_vm0, %v2355_v34 }
 0x22b   :  { %v1974_v33 = vpop.eup %1973 }
 0x22c   :  { %v744_v12 = vmul.f32 %v1972_v48, %v743_v30  ;;  %v710_v7 = vmul.f32 %v1974_v33, %v545_v50  ;;  %vm716_vm14 = vweird.f32 %v1974_v33 }
 0x22d   :  { %vm717_vm1 = vmor %vm715_vm15, %vm716_vm14 }
 0x22e   :  { %v748_v32 = vsel %vm747_vm11, %v1972_v48, %v744_v12  ;;  %v711_v51 = vmul.f32 %v1974_v33, %v710_v7 }
 0x22f   :  { %v768_v34 = vmul.f32 %v748_v32, %v2514_v11 }
 0x230   :  { %v712_v9 = vmul.f32 0.5, %v711_v51 }
 0x231   :  { %901 = vmatpush.msra.mxu3 %v768_v34 }
 0x232   :  { %v713_v13 = vsub.f32 1.5, %v712_v9  ;;  %1872 = vmatmul.msk.f32.gmra.mxu2 %vm85_vm0, %v2288_v23 }
 0x233   :  { %902 = vmatpush.msra.mxu3 %v767_v17 }
 0x234   :  { %v714_v53 = vmul.f32 %v1974_v33, %v713_v13 }
 0x235   :  { %903 = vmatpush.msra.mxu3 %v766_v59 }
 0x236   :  { %v718_v5 = vsel %vm717_vm1, %v1974_v33, %v714_v53 }
 0x237   :  { %v765_v11 = vmul.f32 %v718_v5, %v2520_v43 }
 0x239   :  { %904 = vmatpush.msra.mxu3 %v765_v11 }
 0x23a   :  { %1873 = vmatmul.msk.f32.vlgmr.msra.gmra.mxu3 %vm85_vm0, %v2371_v38 }
 0x241   :  { %v790_v58 = vpop.f32.mrf.mxu2 }
 0x242   :  { %1874 = vmatmul.msk.f32.gmra.mxu3 %vm85_vm0, %v2378_v39  ;;  %1877 = vmatmul.msk.f32.vlgmr.msrb.gmra.mxu0 %vm85_vm0, %v790_v58 }
 0x249   :  { %v793_v23 = vpop.f32.mrf.mxu2 }
 0x24a   :  { %1875 = vmatmul.msk.f32.gmra.mxu3 %vm85_vm0, %v2385_v40  ;;  %1878 = vmatmul.msk.f32.gmra.mxu0 %vm85_vm0, %v793_v23 }
 0x251   :  { %v796_v49 = vpop.f32.mrf.mxu2 }
 0x252   :  { %1876 = vmatmul.msk.f32.gmra.mxu3 %vm85_vm0, %v2392_v41  ;;  %1879 = vmatmul.msk.f32.gmra.mxu0 %vm85_vm0, %v796_v49 }
 0x259   :  { %v799_v43 = vpop.f32.mrf.mxu2 }
 0x25a   :  { %1880 = vmatmul.msk.f32.gmra.mxu0 %vm85_vm0, %v799_v43 }
 0x261   :  { %v819_v38 = vpop.f32.mrf.mxu3 }
 0x262   :  { %1881 = vmatmul.msk.f32.gmra.mxu0 %vm85_vm0, %v819_v38 }
 0x269   :  { %v822_v39 = vpop.f32.mrf.mxu3 }
 0x26a   :  { %1882 = vmatmul.msk.f32.gmra.mxu0 %vm85_vm0, %v822_v39 }
 0x271   :  { %v825_v10 = vpop.f32.mrf.mxu3 }
 0x272   :  { %1883 = vmatmul.msk.f32.gmra.mxu0 %vm85_vm0, %v825_v10 }
 0x277   :  { %v848_v16 = vpop.f32.mrf.mxu0 }
 0x279   :  { %v828_v40 = vpop.f32.mrf.mxu3 }
 0x27a   :  { %1884 = vmatmul.msk.f32.gmra.mxu0 %vm85_vm0, %v828_v40 }
 0x27f   :  { %v851_v41 = vpop.f32.mrf.mxu0 }
 0x282   :  { %1885 = vmatmul.msk.f32.gmra.mxu0 %vm85_vm0, %v848_v16 }
 0x287   :  { %v854_v42 = vpop.f32.mrf.mxu0 }
 0x28a   :  { %1886 = vmatmul.msk.f32.gmra.mxu0 %vm85_vm0, %v851_v41 }
 0x28f   :  { %v857_v21 = vpop.f32.mrf.mxu0 }
 0x292   :  { %1887 = vmatmul.msk.f32.gmra.mxu0 %vm85_vm0, %v854_v42 }
 0x29a   :  { %1888 = vmatmul.msk.f32.gmra.mxu0 %vm85_vm0, %v857_v21 }
 0x29d   :  { %v877_v8 = vpop.f32.mrf.mxu2 }
 0x2a2   :  { %1889 = vmatmul.msk.f32.gmra.mxu0 %vm85_vm0, %v877_v8 }
 0x2a5   :  { %v880_v1 = vpop.f32.mrf.mxu2 }
 0x2a6   :  { %1890 = vmatmul.msk.f32.vlgmr.msra.gmra.mxu2 %vm85_vm0, %v880_v1 }
 0x2ad   :  { %v883_v55 = vpop.f32.mrf.mxu2 }
 0x2ae   :  { %1891 = vmatmul.msk.f32.gmra.mxu2 %vm85_vm0, %v883_v55 }
 0x2b5   :  { %v886_v18 = vpop.f32.mrf.mxu2 }
 0x2b6   :  { %1892 = vmatmul.msk.f32.gmra.mxu2 %vm85_vm0, %v886_v18 }
 0x2bd   :  { %v906_v14 = vpop.f32.mrf.mxu3 }
 0x2be   :  { %1893 = vmatmul.msk.f32.gmra.mxu2 %vm85_vm0, %v906_v14 }
 0x2bf   :  { %v995_v4 = vpop.f32.mrf.mxu0 }
 0x2c0   :  { %v2727_v11 = vmax.f32 %v995_v4, 0.0 }
 0x2c2   :  { %v1075_v43 = vmul.f32 %v2727_v11, %v2727_v11 }
 0x2c4   :  { %v1095_v39 = vsel %vm85_vm0, %v1075_v43, 0.0 }
 0x2c5   :  { %v909_v22 = vpop.f32.mrf.mxu3 }
 0x2c6   :  { %1894 = vmatmul.msk.f32.gmra.mxu2 %vm85_vm0, %v909_v22 }
 0x2c7   :  { %v2670_v62 = vpop.f32.mrf.mxu0 }
 0x2c8   :  { %v2743_v42 = vmax.f32 %v2670_v62, 0.0  ;;  %v1398_v62 = vld [vmem:[%s3010_s4 + $0x18] sm:$0xff] }
 0x2c9   :  { %1505 = vmatpush.msrb.mxu3 %v1398_v62 }
 0x2ca   :  { %v1076_v55 = vmul.f32 %v2743_v42, %v2743_v42 }
 0x2cc   :  { %v1098_v4 = vsel %vm85_vm0, %v1076_v55, 0.0 }
 0x2cd   :  { %v912_v44 = vpop.f32.mrf.mxu3 }
 0x2ce   :  { %1895 = vmatmul.msk.f32.gmra.mxu2 %vm85_vm0, %v912_v44 }
 0x2cf   :  { %v2673_v26 = vpop.f32.mrf.mxu0 }
 0x2d0   :  { %v2753_v14 = vmax.f32 %v2673_v26, 0.0  ;;  %v1397_v26 = vld [vmem:[%s3010_s4 + $0x10] sm:$0xff] }
 0x2d1   :  { %1506 = vmatpush.msrb.mxu3 %v1397_v26 }
 0x2d5   :  { %v915_v25 = vpop.f32.mrf.mxu3 }
 0x2d6   :  { %1896 = vmatmul.msk.f32.gmra.mxu2 %vm85_vm0, %v915_v25 }
 0x2d7   :  { %v2676_v15 = vpop.f32.mrf.mxu0 }
 0x2df   :  { %v1007_v24 = vpop.f32.mrf.mxu0 }
 0x2e0   :  { %v2678_v28 = vmax.f32 %v1007_v24, 0.0  ;;  %v1077_v24 = vmul.f32 %v2753_v14, %v2753_v14 }
 0x2e2   :  { %v1079_v57 = vmul.f32 %v2678_v28, %v2678_v28 }
 0x2e4   :  { %v1107_v6 = vsel %vm85_vm0, %v1079_v57, 0.0 }
 0x2e5   :  { %1108 = vadd.xlane.f32.xlu2 %v1107_v6  ;;  %v1396_v6 = vld [vmem:[%s3010_s4 + $0x8] sm:$0xff] }
 0x2e6   :  { %1507 = vmatpush.msrb.mxu3 %v1396_v6 }
 0x2e7   :  { %v1010_v20 = vpop.f32.mrf.mxu0 }
 0x2e8   :  { %v2683_v37 = vmax.f32 %v1010_v20, 0.0  ;;  %v2773_v20 = vmax.f32 %v2676_v15, 0.0 }
 0x2ea   :  { %v1080_v36 = vmul.f32 %v2683_v37, %v2683_v37 }
 0x2ec   :  { %v1110_v27 = vsel %vm85_vm0, %v1080_v36, 0.0  ;;  %v1101_v36 = vsel %vm85_vm0, %v1077_v24, 0.0 }
 0x2ed   :  { %1111 = vadd.xlane.f32.xlu0 %v1110_v27 }
 0x2ef   :  { %v1013_v31 = vpop.f32.mrf.mxu0 }
 0x2f0   :  { %v2688_v47 = vmax.f32 %v1013_v31, 0.0  ;;  %v1395_v31 = vld [vmem:[%s3010_s4] sm:$0xff]  ;;  %s2142_s4 = smov 32  }
 0x2f1   :  { %1508 = vmatpush.msrb.mxu3 %v1395_v31 }
 0x2f2   :  { %v1081_v60 = vmul.f32 %v2688_v47, %v2688_v47 }
 0x2f4   :  { %v1113_v56 = vsel %vm85_vm0, %v1081_v60, 0.0 }
 0x2f5   :  { %1114 = vadd.xlane.f32.xlu1 %v1113_v56 }
 0x2f7   :  { %v1016_v45 = vpop.f32.mrf.mxu0 }
 0x2f8   :  { %v2693_v0 = vmax.f32 %v1016_v45, 0.0  ;;  %v1078_v45 = vmul.f32 %v2773_v20, %v2773_v20 }
 0x2fa   :  { %v1082_v48 = vmul.f32 %v2693_v0, %v2693_v0 }
 0x2fc   :  { %v1116_v50 = vsel %vm85_vm0, %v1082_v48, 0.0  ;;  %v1104_v48 = vsel %vm85_vm0, %v1078_v45, 0.0 }
 0x2fd   :  { %1117 = vadd.xlane.f32.xlu2 %v1116_v50 }
 0x2ff   :  { %v1019_v52 = vpop.f32.mrf.mxu0 }
 0x300   :  { %v2698_v2 = vmax.f32 %v1019_v52, 0.0 }
 0x302   :  { %v1083_v61 = vmul.f32 %v2698_v2, %v2698_v2 }
 0x304   :  { %v1119_v29 = vsel %vm85_vm0, %v1083_v61, 0.0 }
 0x305   :  { %1120 = vadd.xlane.f32.xlu0 %v1119_v29 }
 0x307   :  { %v1022_v46 = vpop.f32.mrf.mxu0 }
 0x308   :  { %v2703_v3 = vmax.f32 %v1022_v46, 0.0 }
 0x30a   :  { %v1084_v30 = vmul.f32 %v2703_v3, %v2703_v3 }
 0x30c   :  { %v1122_v63 = vsel %vm85_vm0, %v1084_v30, 0.0 }
 0x30d   :  { %1123 = vadd.xlane.f32.xlu1 %v1122_v63 }
 0x30f   :  { %v1025_v33 = vpop.f32.mrf.mxu0 }
 0x310   :  { %v2708_v12 = vmax.f32 %v1025_v33, 0.0 }
 0x312   :  { %v1085_v7 = vmul.f32 %v2708_v12, %v2708_v12 }
 0x314   :  { %v1125_v35 = vsel %vm85_vm0, %v1085_v7, 0.0 }
 0x315   :  { %1126 = vadd.xlane.f32.xlu2 %v1125_v35 }
 0x317   :  { %v1028_v32 = vpop.f32.mrf.mxu0 }
 0x318   :  { %v2713_v51 = vmax.f32 %v1028_v32, 0.0 }
 0x31a   :  { %v1086_v19 = vmul.f32 %v2713_v51, %v2713_v51 }
 0x31c   :  { %v1128_v34 = vsel %vm85_vm0, %v1086_v19, 0.0 }
 0x31d   :  { %1129 = vadd.xlane.f32.xlu0 %v1128_v34 }
 0x31f   :  { %v1031_v9 = vpop.f32.mrf.mxu0 }
 0x320   :  { %v2718_v54 = vmax.f32 %v1031_v9, 0.0 }
 0x322   :  { %v1087_v17 = vmul.f32 %v2718_v54, %v2718_v54 }
 0x324   :  { %v1131_v13 = vsel %vm85_vm0, %v1087_v17, 0.0 }
 0x325   :  { %1132 = vadd.xlane.f32.xlu1 %v1131_v13 }
 0x329   :  { %v1034_v59 = vpop.f32.mrf.mxu2 }
 0x32a   :  { %v2723_v53 = vmax.f32 %v1034_v59, 0.0 }
 0x32c   :  { %v1088_v5 = vmul.f32 %v2723_v53, %v2723_v53 }
 0x32e   :  { %v1134_v58 = vsel %vm85_vm0, %v1088_v5, 0.0 }
 0x32f   :  { %1135 = vadd.xlane.f32.xlu2 %v1134_v58 }
 0x331   :  { %v1037_v23 = vpop.f32.mrf.mxu2 }
 0x332   :  { %v2730_v49 = vmax.f32 %v1037_v23, 0.0 }
 0x334   :  { %v1089_v38 = vmul.f32 %v2730_v49, %v2730_v49 }
 0x336   :  { %v1137_v10 = vsel %vm85_vm0, %v1089_v38, 0.0 }
 0x337   :  { %1096 = vadd.xlane.f32.xlu2 %v1095_v39  ;;  %1138 = vadd.xlane.f32.xlu0 %v1137_v10 }
 0x339   :  { %v1040_v40 = vpop.f32.mrf.mxu2 }
 0x33a   :  { %v2738_v16 = vmax.f32 %v1040_v40, 0.0 }
 0x33c   :  { %v1090_v41 = vmul.f32 %v2738_v16, %v2738_v16 }
 0x33e   :  { %v1140_v21 = vsel %vm85_vm0, %v1090_v41, 0.0 }
 0x33f   :  { %1141 = vadd.xlane.f32.xlu1 %v1140_v21 }
 0x341   :  { %v1043_v8 = vpop.f32.mrf.mxu2 }
 0x342   :  { %v2746_v1 = vmax.f32 %v1043_v8, 0.0 }
 0x344   :  { %v1091_v18 = vmul.f32 %v2746_v1, %v2746_v1 }
 0x346   :  { %v1143_v22 = vsel %vm85_vm0, %v1091_v18, 0.0 }
 0x347   :  { %1099 = vadd.xlane.f32.xlu1 %v1098_v4  ;;  %1144 = vadd.xlane.f32.xlu0 %v1143_v22 }
 0x349   :  { %v1046_v44 = vpop.f32.mrf.mxu2 }
 0x34a   :  { %v2760_v25 = vmax.f32 %v1046_v44, 0.0 }
 0x34c   :  { %v1092_v57 = vmul.f32 %v2760_v25, %v2760_v25 }
 0x34e   :  { %v1146_v27 = vsel %vm85_vm0, %v1092_v57, 0.0 }
 0x34f   :  { %1102 = vadd.xlane.f32.xlu0 %v1101_v36  ;;  %1147 = vadd.xlane.f32.xlu2 %v1146_v27 }
 0x351   :  { %v1049_v60 = vpop.f32.mrf.mxu2 }
 0x352   :  { %v2780_v56 = vmax.f32 %v1049_v60, 0.0 }
 0x354   :  { %v1093_v15 = vmul.f32 %v2780_v56, %v2780_v56 }
 0x356   :  { %v1149_v50 = vsel %vm85_vm0, %v1093_v15, 0.0 }
 0x357   :  { %1105 = vadd.xlane.f32.xlu2 %v1104_v48  ;;  %1150 = vadd.xlane.f32.xlu1 %v1149_v50 }
 0x358   :  { %v1109_v52 = vpop.xlane.xlu2 %1108 }
 0x359   :  { %v1159_v61 = vmax.f32 %v1109_v52, 1e-24  ;;  %v1052_v29 = vpop.f32.mrf.mxu2 }
 0x35a   :  { %v2788_v46 = vmax.f32 %v1052_v29, 0.0 }
 0x35b   :  { %1975 = vrsqrt.f32 %v1159_v61  ;;  %vm1221_vm2 = vweird.f32 %v1159_v61 }
 0x35c   :  { %v1094_v30 = vmul.f32 %v2788_v46, %v2788_v46 }
 0x35e   :  { %v1152_v63 = vsel %vm85_vm0, %v1094_v30, 0.0 }
 0x35f   :  { %1153 = vadd.xlane.f32.xlu0 %v1152_v63 }
 0x360   :  { %v1112_v33 = vpop.xlane.xlu0 %1111 }
 0x361   :  { %v1976_v7 = vpop.eup %1975  ;;  %v1160_v35 = vmax.f32 %v1112_v33, 1e-24 }
 0x362   :  { %v1216_v32 = vmul.f32 %v1976_v7, %v1159_v61  ;;  %vm1222_vm3 = vweird.f32 %v1976_v7 }
 0x363   :  { %1977 = vrsqrt.f32 %v1160_v35  ;;  %vm1223_vm4 = vmor %vm1221_vm2, %vm1222_vm3  ;;  %vm1231_vm5 = vweird.f32 %v1160_v35 }
 0x364   :  { %v1217_v19 = vmul.f32 %v1976_v7, %v1216_v32 }
 0x366   :  { %v1218_v34 = vmul.f32 0.5, %v1217_v19 }
 0x368   :  { %v1219_v9 = vsub.f32 1.5, %v1218_v34  ;;  %v1115_v17 = vpop.xlane.xlu1 %1114 }
 0x369   :  { %v1978_v13 = vpop.eup %1977  ;;  %v1161_v59 = vmax.f32 %v1115_v17, 1e-24 }
 0x36a   :  { %v1220_v5 = vmul.f32 %v1976_v7, %v1219_v9  ;;  %v1226_v58 = vmul.f32 %v1978_v13, %v1160_v35  ;;  %vm1232_vm6 = vweird.f32 %v1978_v13 }
 0x36b   :  { %1979 = vrsqrt.f32 %v1161_v59  ;;  %vm1233_vm7 = vmor %vm1231_vm5, %vm1232_vm6  ;;  %vm1241_vm8 = vweird.f32 %v1161_v59 }
 0x36c   :  { %v1224_v23 = vsel %vm1223_vm4, %v1976_v7, %v1220_v5  ;;  %v1227_v43 = vmul.f32 %v1978_v13, %v1226_v58 }
 0x36d   :  { %v2794_v38 = vmul.f32 %v1224_v23, %v2678_v28 }
 0x36e   :  { %v1228_v39 = vmul.f32 0.5, %v1227_v43 }
 0x36f   :  { %1901 = vmatmul.msk.f32.vlgmr.msrb.gmra.mxu3 %vm85_vm0, %v2794_v38 }
 0x370   :  { %v1229_v10 = vsub.f32 1.5, %v1228_v39  ;;  %v1118_v40 = vpop.xlane.xlu2 %1117  ;;  %v1402_v39 = vld [vmem:[#allocation2 + $0x18] sm:$0xff] }
 0x371   :  { %v1980_v41 = vpop.eup %1979  ;;  %v1162_v21 = vmax.f32 %v1118_v40, 1e-24  ;;  %1428 = vmatpush.msrb.mxu2 %v1402_v39 }
 0x372   :  { %v1236_v8 = vmul.f32 %v1980_v41, %v1161_v59  ;;  %v1230_v55 = vmul.f32 %v1978_v13, %v1229_v10  ;;  %vm1242_vm9 = vweird.f32 %v1980_v41 }
 0x373   :  { %1981 = vrsqrt.f32 %v1162_v21  ;;  %vm1243_vm10 = vmor %vm1241_vm8, %vm1242_vm9  ;;  %vm1251_vm11 = vweird.f32 %v1162_v21 }
 0x374   :  { %v1237_v18 = vmul.f32 %v1980_v41, %v1236_v8  ;;  %v1234_v4 = vsel %vm1233_vm7, %v1978_v13, %v1230_v55 }
 0x375   :  { %v2799_v22 = vmul.f32 %v1234_v4, %v2683_v37 }
 0x376   :  { %v1238_v28 = vmul.f32 0.5, %v1237_v18 }
 0x377   :  { %1902 = vmatmul.msk.f32.gmra.mxu3 %vm85_vm0, %v2799_v22 }
 0x378   :  { %v1239_v62 = vsub.f32 1.5, %v1238_v28  ;;  %v1121_v44 = vpop.xlane.xlu0 %1120 }
 0x379   :  { %v1982_v24 = vpop.eup %1981  ;;  %v1163_v26 = vmax.f32 %v1121_v44, 1e-24 }
 0x37a   :  { %v1246_v57 = vmul.f32 %v1982_v24, %v1162_v21  ;;  %v1240_v6 = vmul.f32 %v1980_v41, %v1239_v62  ;;  %vm1252_vm12 = vweird.f32 %v1982_v24 }
 0x37b   :  { %1983 = vrsqrt.f32 %v1163_v26  ;;  %vm1253_vm13 = vmor %vm1251_vm11, %vm1252_vm12  ;;  %vm1261_vm14 = vweird.f32 %v1163_v26 }
 0x37c   :  { %v1247_v36 = vmul.f32 %v1982_v24, %v1246_v57  ;;  %v1244_v27 = vsel %vm1243_vm10, %v1980_v41, %v1240_v6  ;;  %v1400_v57 = vld [vmem:[#allocation2 + $0x8] sm:$0xff] }
 0x37d   :  { %v2804_v31 = vmul.f32 %v1244_v27, %v2688_v47 }
 0x37e   :  { %v1248_v37 = vmul.f32 0.5, %v1247_v36  ;;  %v1399_v36 = vld [vmem:[#allocation2] sm:$0xff] }
 0x37f   :  { %1903 = vmatmul.msk.f32.gmra.mxu3 %vm85_vm0, %v2804_v31 }
 0x380   :  { %v1249_v60 = vsub.f32 1.5, %v1248_v37  ;;  %v1124_v45 = vpop.xlane.xlu1 %1123 }
 0x381   :  { %v1984_v15 = vpop.eup %1983  ;;  %v1164_v48 = vmax.f32 %v1124_v45, 1e-24 }
 0x382   :  { %v1256_v50 = vmul.f32 %v1984_v15, %v1163_v26  ;;  %v1250_v52 = vmul.f32 %v1982_v24, %v1249_v60  ;;  %vm1262_vm15 = vweird.f32 %v1984_v15 }
 0x383   :  { %1985 = vrsqrt.f32 %v1164_v48  ;;  %vm1263_vm1 = vmor %vm1261_vm14, %vm1262_vm15  ;;  %vm1271_vm2 = vweird.f32 %v1164_v48 }
 0x384   :  { %v1257_v61 = vmul.f32 %v1984_v15, %v1256_v50  ;;  %v1254_v29 = vsel %vm1253_vm13, %v1982_v24, %v1250_v52  ;;  %v1401_v24 = vld [vmem:[#allocation2 + $0x10] sm:$0xff] }
 0x385   :  { %v2809_v30 = vmul.f32 %v1254_v29, %v2693_v0  ;;  %1429 = vmatpush.msrb.mxu2 %v1401_v24 }
 0x386   :  { %v1258_v47 = vmul.f32 0.5, %v1257_v61 }
 0x387   :  { %1904 = vmatmul.msk.f32.gmra.mxu3 %vm85_vm0, %v2809_v30  ;;  %1430 = vmatpush.msrb.mxu2 %v1400_v57 }
 0x388   :  { %v1259_v63 = vsub.f32 1.5, %v1258_v47  ;;  %v1127_v33 = vpop.xlane.xlu2 %1126 }
 0x389   :  { %v1986_v7 = vpop.eup %1985  ;;  %v1165_v35 = vmax.f32 %v1127_v33, 1e-24  ;;  %1431 = vmatpush.msrb.mxu2 %v1399_v36 }
 0x38a   :  { %v1266_v32 = vmul.f32 %v1986_v7, %v1164_v48  ;;  %v1260_v19 = vmul.f32 %v1984_v15, %v1259_v63  ;;  %vm1272_vm3 = vweird.f32 %v1986_v7 }
 0x38b   :  { %1987 = vrsqrt.f32 %v1165_v35  ;;  %vm1273_vm4 = vmor %vm1271_vm2, %vm1272_vm3  ;;  %vm1281_vm5 = vweird.f32 %v1165_v35 }
 0x38c   :  { %v1267_v34 = vmul.f32 %v1986_v7, %v1266_v32  ;;  %v1264_v9 = vsel %vm1263_vm1, %v1984_v15, %v1260_v19 }
 0x38d   :  { %v2814_v17 = vmul.f32 %v1264_v9, %v2698_v2 }
 0x38e   :  { %v1268_v0 = vmul.f32 0.5, %v1267_v34 }
 0x38f   :  { %1905 = vmatmul.msk.f32.gmra.mxu3 %vm85_vm0, %v2814_v17 }
 0x390   :  { %v1269_v13 = vsub.f32 1.5, %v1268_v0  ;;  %v1130_v59 = vpop.xlane.xlu0 %1129 }
 0x391   :  { %v1988_v5 = vpop.eup %1987  ;;  %v1166_v58 = vmax.f32 %v1130_v59, 1e-24 }
 0x392   :  { %v1276_v23 = vmul.f32 %v1988_v5, %v1165_v35  ;;  %v1270_v43 = vmul.f32 %v1986_v7, %v1269_v13  ;;  %vm1282_vm6 = vweird.f32 %v1988_v5 }
 0x393   :  { %1989 = vrsqrt.f32 %v1166_v58  ;;  %vm1283_vm7 = vmor %vm1281_vm5, %vm1282_vm6  ;;  %vm1291_vm8 = vweird.f32 %v1166_v58 }
 0x394   :  { %v1277_v10 = vmul.f32 %v1988_v5, %v1276_v23  ;;  %v1274_v40 = vsel %vm1273_vm4, %v1986_v7, %v1270_v43 }
 0x395   :  { %v2819_v2 = vmul.f32 %v1274_v40, %v2703_v3 }
 0x396   :  { %v1278_v41 = vmul.f32 0.5, %v1277_v10 }
 0x397   :  { %1906 = vmatmul.msk.f32.gmra.mxu3 %vm85_vm0, %v2819_v2 }
 0x398   :  { %v1279_v21 = vsub.f32 1.5, %v1278_v41  ;;  %v1133_v8 = vpop.xlane.xlu1 %1132 }
 0x399   :  { %v1990_v55 = vpop.eup %1989  ;;  %v1167_v18 = vmax.f32 %v1133_v8, 1e-24 }
 0x39a   :  { %v1286_v4 = vmul.f32 %v1990_v55, %v1166_v58  ;;  %v1280_v28 = vmul.f32 %v1988_v5, %v1279_v21  ;;  %vm1292_vm9 = vweird.f32 %v1990_v55 }
 0x39b   :  { %1991 = vrsqrt.f32 %v1167_v18  ;;  %vm1293_vm10 = vmor %vm1291_vm8, %vm1292_vm9  ;;  %vm1301_vm12 = vweird.f32 %v1167_v18 }
 0x39c   :  { %v1287_v62 = vmul.f32 %v1990_v55, %v1286_v4  ;;  %v1284_v44 = vsel %vm1283_vm7, %v1988_v5, %v1280_v28 }
 0x39d   :  { %v2824_v3 = vmul.f32 %v1284_v44, %v2708_v12 }
 0x39e   :  { %v1288_v26 = vmul.f32 0.5, %v1287_v62 }
 0x39f   :  { %1907 = vmatmul.msk.f32.gmra.mxu3 %vm85_vm0, %v2824_v3 }
 0x3a0   :  { %v1289_v6 = vsub.f32 1.5, %v1288_v26 }
 0x3a1   :  { %v1992_v27 = vpop.eup %1991 }
 0x3a2   :  { %v1296_v37 = vmul.f32 %v1992_v27, %v1167_v18  ;;  %v1136_v60 = vpop.xlane.xlu2 %1135  ;;  %v1290_v45 = vmul.f32 %v1990_v55, %v1289_v6  ;;  %vm1302_vm11 = vweird.f32 %v1992_v27 }
 0x3a3   :  { %v1168_v15 = vmax.f32 %v1136_v60, 1e-24  ;;  %vm1303_vm13 = vmor %vm1301_vm12, %vm1302_vm11 }
 0x3a4   :  { %v1297_v12 = vmul.f32 %v1992_v27, %v1296_v37  ;;  %v1294_v48 = vsel %vm1293_vm10, %v1990_v55, %v1290_v45 }
 0x3a5   :  { %1993 = vrsqrt.f32 %v1168_v15  ;;  %v2829_v50 = vmul.f32 %v1294_v48, %v2713_v51  ;;  %vm1311_vm15 = vweird.f32 %v1168_v15 }
 0x3a6   :  { %v1298_v52 = vmul.f32 0.5, %v1297_v12 }
 0x3a7   :  { %1908 = vmatmul.msk.f32.gmra.mxu3 %vm85_vm0, %v2829_v50 }
 0x3a8   :  { %v1299_v61 = vsub.f32 1.5, %v1298_v52 }
 0x3aa   :  { %v1097_v29 = vpop.xlane.xlu2 %1096  ;;  %v1139_v47 = vpop.xlane.xlu0 %1138  ;;  %v1300_v63 = vmul.f32 %v1992_v27, %v1299_v61 }
 0x3ab   :  { %v1994_v33 = vpop.eup %1993  ;;  %v1155_v7 = vmax.f32 %v1097_v29, 1e-24  ;;  %v1169_v35 = vmax.f32 %v1139_v47, 1e-24 }
 0x3ac   :  { %v1306_v32 = vmul.f32 %v1994_v33, %v1168_v15  ;;  %v1304_v19 = vsel %vm1303_vm13, %v1992_v27, %v1300_v63  ;;  %vm1312_vm14 = vweird.f32 %v1994_v33 }
 0x3ad   :  { %1995 = vrsqrt.f32 %v1155_v7  ;;  %v2834_v51 = vmul.f32 %v1304_v19, %v2718_v54  ;;  %vm1313_vm1 = vmor %vm1311_vm15, %vm1312_vm14  ;;  %vm1181_vm4 = vweird.f32 %v1155_v7  ;;  %vm1321_vm6 = vweird.f32 %v1169_v35 }
 0x3ae   :  { %v1307_v34 = vmul.f32 %v1994_v33, %v1306_v32  ;;  %1997 = vrsqrt.f32 %v1169_v35 }
 0x3af   :  { %1909 = vmatmul.msk.f32.gmra.mxu3 %vm85_vm0, %v2834_v51 }
 0x3b0   :  { %v1308_v9 = vmul.f32 0.5, %v1307_v34 }
 0x3b2   :  { %v1309_v0 = vsub.f32 1.5, %v1308_v9  ;;  %v1142_v13 = vpop.xlane.xlu1 %1141 }
 0x3b3   :  { %v1996_v59 = vpop.eup %1995  ;;  %v1170_v5 = vmax.f32 %v1142_v13, 1e-24 }
 0x3b4   :  { %v1998_v58 = vpop.eup %1997  ;;  %v1176_v23 = vmul.f32 %v1996_v59, %v1155_v7  ;;  %v1310_v43 = vmul.f32 %v1994_v33, %v1309_v0  ;;  %vm1182_vm2 = vweird.f32 %v1996_v59 }
 0x3b5   :  { %v1316_v39 = vmul.f32 %v1998_v58, %v1169_v35  ;;  %1999 = vrsqrt.f32 %v1170_v5  ;;  %vm1322_vm3 = vweird.f32 %v1998_v58  ;;  %vm1183_vm5 = vmor %vm1181_vm4, %vm1182_vm2  ;;  %vm1331_vm9 = vweird.f32 %v1170_v5 }
 0x3b6   :  { %v1177_v54 = vmul.f32 %v1996_v59, %v1176_v23  ;;  %v1314_v10 = vsel %vm1313_vm1, %v1994_v33, %v1310_v43  ;;  %vm1323_vm7 = vmor %vm1321_vm6, %vm1322_vm3 }
 0x3b7   :  { %v1317_v40 = vmul.f32 %v1998_v58, %v1316_v39  ;;  %v2839_v41 = vmul.f32 %v1314_v10, %v2723_v53 }
 0x3b8   :  { %v1178_v21 = vmul.f32 0.5, %v1177_v54 }
 0x3b9   :  { %v1318_v8 = vmul.f32 0.5, %v1317_v40  ;;  %1910 = vmatmul.msk.f32.gmra.mxu3 %vm85_vm0, %v2839_v41 }
 0x3ba   :  { %v1179_v55 = vsub.f32 1.5, %v1178_v21  ;;  %v1145_v18 = vpop.xlane.xlu0 %1144  ;;  %v1100_v4 = vpop.xlane.xlu1 %1099 }
 0x3bb   :  { %v2000_v28 = vpop.eup %1999  ;;  %v1319_v62 = vsub.f32 1.5, %v1318_v8  ;;  %v1171_v44 = vmax.f32 %v1145_v18, 1e-24  ;;  %v1156_v24 = vmax.f32 %v1100_v4, 1e-24 }
 0x3bc   :  { %v1326_v26 = vmul.f32 %v2000_v28, %v1170_v5  ;;  %v1180_v57 = vmul.f32 %v1996_v59, %v1179_v55  ;;  %vm1332_vm8 = vweird.f32 %v2000_v28 }
 0x3bd   :  { %2001 = vrsqrt.f32 %v1171_v44  ;;  %v1320_v53 = vmul.f32 %v1998_v58, %v1319_v62  ;;  %vm1333_vm10 = vmor %vm1331_vm9, %vm1332_vm8  ;;  %vm1341_vm13 = vweird.f32 %v1171_v44  ;;  %vm1191_vm15 = vweird.f32 %v1156_v24 }
 0x3be   :  { %v1327_v6 = vmul.f32 %v2000_v28, %v1326_v26  ;;  %2003 = vrsqrt.f32 %v1156_v24  ;;  %v1184_v36 = vsel %vm1183_vm5, %v1996_v59, %v1180_v57 }
 0x3bf   :  { %v1375_v27 = vmul.f32 %v1184_v36, %v2727_v11  ;;  %v1324_v37 = vsel %vm1323_vm7, %v1998_v58, %v1320_v53 }
 0x3c0   :  { %v1328_v60 = vmul.f32 0.5, %v1327_v6  ;;  %v2845_v45 = vmul.f32 %v1324_v37, %v2730_v49 }
 0x3c1   :  { %1777 = vrot.lane.b32.xlu2 %v1375_v27, %s2142_s4  ;;  %1897 = vmatmul.msk.f32.vlgmr.msrb.gmra.mxu2 %vm85_vm0, %v1375_v27 }
 0x3c2   :  { %v1329_v15 = vsub.f32 1.5, %v1328_v60  ;;  %1911 = vmatmul.msk.f32.gmra.mxu3 %vm85_vm0, %v2845_v45  ;;  %v1103_v12 = vpop.xlane.xlu0 %1102  ;;  %v1148_v48 = vpop.xlane.xlu2 %1147 }
 0x3c3   :  { %v2002_v52 = vpop.eup %2001  ;;  %v1157_v61 = vmax.f32 %v1103_v12, 1e-24  ;;  %v2851_v11 = vmax.f32 %v1148_v48, 1e-24 }
 0x3c4   :  { %v2004_v29 = vpop.eup %2003  ;;  %v1336_v49 = vmul.f32 %v2002_v52, %v1171_v44  ;;  %v1330_v47 = vmul.f32 %v2000_v28, %v1329_v15  ;;  %vm1342_vm11 = vweird.f32 %v2002_v52 }
 0x3c5   :  { %v1186_v63 = vmul.f32 %v2004_v29, %v1156_v24  ;;  %2005 = vrsqrt.f32 %v1157_v61  ;;  %vm1192_vm12 = vweird.f32 %v2004_v29  ;;  %vm1343_vm14 = vmor %vm1341_vm13, %vm1342_vm11  ;;  %vm1201_vm3 = vweird.f32 %v1157_v61 }
 0x3c6   :  { %v1337_v33 = vmul.f32 %v2002_v52, %v1336_v49  ;;  %2007 = vrsqrt.f32 %v2851_v11  ;;  %v1334_v7 = vsel %vm1333_vm10, %v2000_v28, %v1330_v47  ;;  %vm1193_vm1 = vmor %vm1191_vm15, %vm1192_vm12  ;;  %vm1351_vm6 = vweird.f32 %v2851_v11 }
 0x3c7   :  { %v1187_v35 = vmul.f32 %v2004_v29, %v1186_v63  ;;  %v2855_v32 = vmul.f32 %v1334_v7, %v2738_v16 }
 0x3c8   :  { %v1338_v19 = vmul.f32 0.5, %v1337_v33 }
 0x3c9   :  { %v1188_v34 = vmul.f32 0.5, %v1187_v35 }
 0x3ca   :  { %v1339_v9 = vsub.f32 1.5, %v1338_v19  ;;  %1912 = vmatmul.msk.f32.gmra.mxu3 %vm85_vm0, %v2855_v32  ;;  %v1106_v0 = vpop.xlane.xlu2 %1105  ;;  %v1151_v13 = vpop.xlane.xlu1 %1150 }
 0x3cb   :  { %v2006_v59 = vpop.eup %2005  ;;  %v1189_v5 = vsub.f32 1.5, %v1188_v34  ;;  %v1158_v58 = vmax.f32 %v1106_v0, 1e-24  ;;  %v1173_v23 = vmax.f32 %v1151_v13, 1e-24 }
 0x3cc   :  { %v2008_v43 = vpop.eup %2007  ;;  %v1196_v39 = vmul.f32 %v2006_v59, %v1157_v61  ;;  %v1340_v54 = vmul.f32 %v2002_v52, %v1339_v9  ;;  %vm1202_vm2 = vweird.f32 %v2006_v59 }
 0x3cd   :  { %v1346_v16 = vmul.f32 %v2008_v43, %v2851_v11  ;;  %2009 = vrsqrt.f32 %v1158_v58  ;;  %v1190_v40 = vmul.f32 %v2004_v29, %v1189_v5  ;;  %vm1352_vm4 = vweird.f32 %v2008_v43  ;;  %vm1203_vm5 = vmor %vm1201_vm3, %vm1202_vm2 }
 0x3ce   :  { %v1197_v10 = vmul.f32 %v2006_v59, %v1196_v39  ;;  %2011 = vrsqrt.f32 %v1173_v23  ;;  %v1344_v8 = vsel %vm1343_vm14, %v2002_v52, %v1340_v54  ;;  %vm1353_vm7 = vmor %vm1351_vm6, %vm1352_vm4  ;;  %vm1361_vm8 = vweird.f32 %v1173_v23 }
 0x3cf   :  { %v1347_v21 = vmul.f32 %v2008_v43, %v1346_v16  ;;  %v1194_v18 = vsel %vm1193_vm1, %v2004_v29, %v1190_v40  ;;  %v2861_v4 = vmul.f32 %v1344_v8, %v2746_v1  ;;  %vm1211_vm11 = vweird.f32 %v1158_v58 }
 0x3d0   :  { %v1198_v55 = vmul.f32 0.5, %v1197_v10  ;;  %v2864_v62 = vmul.f32 %v1194_v18, %v2743_v42  ;;  %vm1793_vm2 = vcmask 523264  }
 0x3d1   :  { %v1348_v28 = vmul.f32 0.5, %v1347_v21 }
 0x3d2   :  { %v1199_v44 = vsub.f32 1.5, %v1198_v55  ;;  %1913 = vmatmul.msk.f32.gmra.mxu3 %vm85_vm0, %v2861_v4  ;;  %v1154_v24 = vpop.xlane.xlu0 %1153  ;;  %1898 = vmatmul.msk.f32.gmra.mxu2 %vm85_vm0, %v2864_v62 }
 0x3d3   :  { %v2010_v26 = vpop.eup %2009  ;;  %v1349_v57 = vsub.f32 1.5, %v1348_v28  ;;  %v1174_v53 = vmax.f32 %v1154_v24, 1e-24 }
 0x3d4   :  { %v2012_v6 = vpop.eup %2011  ;;  %v1206_v1 = vmul.f32 %v2010_v26, %v1158_v58  ;;  %v1200_v36 = vmul.f32 %v2006_v59, %v1199_v44  ;;  %vm1212_vm10 = vweird.f32 %v2010_v26 }
 0x3d5   :  { %v1356_v42 = vmul.f32 %v2012_v6, %v1173_v23  ;;  %2013 = vrsqrt.f32 %v1174_v53  ;;  %v1350_v60 = vmul.f32 %v2008_v43, %v1349_v57  ;;  %vm1362_vm9 = vweird.f32 %v2012_v6  ;;  %vm1213_vm13 = vmor %vm1211_vm11, %vm1212_vm10 }
 0x3d6   :  { %v1207_v27 = vmul.f32 %v2010_v26, %v1206_v1  ;;  %v1204_v37 = vsel %vm1203_vm5, %v2006_v59, %v1200_v36  ;;  %vm1363_vm12 = vmor %vm1361_vm8, %vm1362_vm9  ;;  %vm1371_vm14 = vweird.f32 %v1174_v53 }
 0x3d7   :  { %v1357_v15 = vmul.f32 %v2012_v6, %v1356_v42  ;;  %v2872_v12 = vmul.f32 %v1204_v37, %v2753_v14  ;;  %v1354_v52 = vsel %vm1353_vm7, %v2008_v43, %v1350_v60 }
 0x3d8   :  { %v1208_v48 = vmul.f32 0.5, %v1207_v27  ;;  %v2875_v61 = vmul.f32 %v1354_v52, %v2760_v25 }
 0x3d9   :  { %v1358_v29 = vmul.f32 0.5, %v1357_v15 }
 0x3da   :  { %v1209_v49 = vsub.f32 1.5, %v1208_v48  ;;  %1899 = vmatmul.msk.f32.gmra.mxu2 %vm85_vm0, %v2872_v12  ;;  %1914 = vmatmul.msk.f32.gmra.mxu3 %vm85_vm0, %v2875_v61 }
 0x3db   :  { %v2014_v47 = vpop.eup %2013  ;;  %v1359_v11 = vsub.f32 1.5, %v1358_v29 }
 0x3dc   :  { %v1210_v14 = vmul.f32 %v2010_v26, %v1209_v49  ;;  %v1366_v63 = vmul.f32 %v2014_v47, %v1174_v53  ;;  %vm1372_vm15 = vweird.f32 %v2014_v47 }
 0x3dd   :  { %v1360_v33 = vmul.f32 %v2012_v6, %v1359_v11  ;;  %vm1373_vm1 = vmor %vm1371_vm14, %vm1372_vm15 }
 0x3de   :  { %v1214_v7 = vsel %vm1213_vm13, %v2010_v26, %v1210_v14  ;;  %v1367_v35 = vmul.f32 %v2014_v47, %v1366_v63 }
 0x3df   :  { %v2882_v25 = vmul.f32 %v1214_v7, %v2773_v20  ;;  %v1364_v19 = vsel %vm1363_vm12, %v2012_v6, %v1360_v33 }
 0x3e0   :  { %v1368_v34 = vmul.f32 0.5, %v1367_v35  ;;  %v2885_v9 = vmul.f32 %v1364_v19, %v2780_v56 }
 0x3e2   :  { %v1369_v0 = vsub.f32 1.5, %v1368_v34  ;;  %1900 = vmatmul.msk.f32.gmra.mxu2 %vm85_vm0, %v2882_v25  ;;  %1915 = vmatmul.msk.f32.gmra.mxu3 %vm85_vm0, %v2885_v9 }
 0x3e4   :  { %v1370_v13 = vmul.f32 %v2014_v47, %v1369_v0 }
 0x3e6   :  { %v1374_v59 = vsel %vm1373_vm1, %v2014_v47, %v1370_v13 }
 0x3e7   :  { %v2892_v20 = vmul.f32 %v1374_v59, %v2788_v46  ;;  %v2902_v46 = vld [vmem:[%s3012_s6] ss:$0 sm:$0xff]  ;;  %s2143_s6 = smov [#allocation5]  }
 0x3e8   :  { %s1802_s17 = sshll.u32 %s2143_s6, 4  ;;  %s1803_s17 = int_to_ptr.vmem [resolvable:$true] %s1802_s17 }
 0x3ea   :  { %1916 = vmatmul.msk.f32.gmra.mxu3 %vm85_vm0, %v2892_v20 }
 0x3f2   :  { %v1510_v5 = vpop.f32.mrf.mxu3 }
 0x3fa   :  { %v1513_v58 = vpop.f32.mrf.mxu3 }
 0x402   :  { %v1516_v56 = vpop.f32.mrf.mxu3 }
 0x40a   :  { %v1519_v23 = vpop.f32.mrf.mxu3 }
 0x412   :  { %v1522_v43 = vpop.f32.mrf.mxu3 }
 0x41a   :  { %v1525_v39 = vpop.f32.mrf.mxu3 }
 0x422   :  { %v1528_v54 = vpop.f32.mrf.mxu3 }
 0x42a   :  { %v1531_v16 = vpop.f32.mrf.mxu3 }
 0x432   :  { %v1534_v10 = vpop.f32.mrf.mxu3 }
 0x43c   :  { %v1537_v40 = vpop.f32.mrf.mxu3 }
 0x444   :  { %v2896_v21 = vpop.f32.mrf.mxu2 }
 0x445   :  { %v1511_v8 = vadd.f32 %v1510_v5, %v2896_v21  ;;  %v1540_v55 = vpop.f32.mrf.mxu3  ;;  %v1523_v53 = vadd.f32 %v1522_v43, %v2896_v21  ;;  %v1535_v11 = vadd.f32 %v1534_v10, %v2896_v21 }
 0x447   :  { %2015 = vtanh.f32 %v1511_v8 }
 0x44d   :  { %v2016_v18 = vpop.eup %2015  ;;  %v1543_v24 = vpop.f32.mrf.mxu3 }
 0x44e   :  { %v1577_v28 = vmul.f32 %v2016_v18, %v2902_v46 }
 0x450   :  { %v1593_v44 = vsel %vm85_vm0, %v1577_v28, 0.0 }
 0x451   :  { %1594 = vadd.xlane.f32.xlu1 %v1593_v44 }
 0x455   :  { %v1436_v26 = vpop.f32.mrf.mxu2  ;;  %v1546_v42 = vpop.f32.mrf.mxu3 }
 0x456   :  { %v1514_v57 = vadd.f32 %v1513_v58, %v1436_v26  ;;  %v1526_v37 = vadd.f32 %v1525_v39, %v1436_v26  ;;  %v1538_v5 = vadd.f32 %v1537_v40, %v1436_v26 }
 0x458   :  { %2017 = vtanh.f32 %v1514_v57 }
 0x459   :  { %2019 = vtanh.f32 %v1523_v53 }
 0x45d   :  { %v1439_v6 = vpop.f32.mrf.mxu2  ;;  %v1549_v7 = vpop.f32.mrf.mxu3 }
 0x45e   :  { %v2018_v1 = vpop.eup %2017  ;;  %v1517_v36 = vadd.f32 %v1516_v56, %v1439_v6  ;;  %v1529_v63 = vadd.f32 %v1528_v54, %v1439_v6  ;;  %v1541_v33 = vadd.f32 %v1540_v55, %v1439_v6  ;;  %v1550_v39 = vadd.f32 %v1549_v7, %v1436_v26 }
 0x45f   :  { %v1578_v27 = vmul.f32 %v2018_v1, %v2902_v46  ;;  %v2020_v15 = vpop.eup %2019 }
 0x460   :  { %2021 = vtanh.f32 %v1517_v36  ;;  %v1581_v52 = vmul.f32 %v2020_v15, %v2902_v46 }
 0x461   :  { %v1596_v60 = vsel %vm85_vm0, %v1578_v27, 0.0  ;;  %2023 = vtanh.f32 %v1526_v37 }
 0x462   :  { %1597 = vadd.xlane.f32.xlu2 %v1596_v60  ;;  %v1605_v35 = vsel %vm85_vm0, %v1581_v52, 0.0 }
 0x465   :  { %v1442_v48 = vpop.f32.mrf.mxu2  ;;  %v1552_v18 = vpop.f32.mrf.mxu3 }
 0x466   :  { %v2022_v29 = vpop.eup %2021  ;;  %v1520_v49 = vadd.f32 %v1519_v23, %v1442_v48  ;;  %v1532_v47 = vadd.f32 %v1531_v16, %v1442_v48  ;;  %v1544_v56 = vadd.f32 %v1543_v24, %v1442_v48  ;;  %v1547_v24 = vadd.f32 %v1546_v42, %v2896_v21 }
 0x467   :  { %v1579_v14 = vmul.f32 %v2022_v29, %v2902_v46  ;;  %v2024_v34 = vpop.eup %2023  ;;  %v1553_v26 = vadd.f32 %v1552_v18, %v1439_v6 }
 0x468   :  { %2025 = vtanh.f32 %v1520_v49  ;;  %v1582_v0 = vmul.f32 %v2024_v34, %v2902_v46  ;;  %v2945_v34 = vpop.permute.xlu2 %1777 }
 0x469   :  { %2027 = vtanh.f32 %v1532_v47  ;;  %v1599_v19 = vsel %vm85_vm0, %v1579_v14, 0.0 }
 0x46a   :  { %1606 = vadd.xlane.f32.xlu2 %v1605_v35  ;;  %1600 = vadd.xlane.f32.xlu0 %v1599_v19  ;;  %2029 = vtanh.f32 %v1535_v11  ;;  %v1608_v54 = vsel %vm85_vm0, %v1582_v0, 0.0 }
 0x46b   :  { %2031 = vtanh.f32 %v1529_v63 }
 0x46c   :  { %2033 = vtanh.f32 %v1541_v33 }
 0x46d   :  { %2035 = vtanh.f32 %v1538_v5  ;;  %v1555_v60 = vpop.f32.mrf.mxu3 }
 0x46e   :  { %v2026_v13 = vpop.eup %2025  ;;  %2037 = vtanh.f32 %v1544_v56  ;;  %v1556_v42 = vadd.f32 %v1555_v60, %v1442_v48 }
 0x46f   :  { %v2028_v59 = vpop.eup %2027  ;;  %v1580_v58 = vmul.f32 %v2026_v13, %v2902_v46  ;;  %2039 = vtanh.f32 %v1550_v39 }
 0x470   :  { %v1584_v23 = vmul.f32 %v2028_v59, %v2902_v46  ;;  %v2030_v43 = vpop.eup %2029  ;;  %2041 = vtanh.f32 %v1547_v24 }
 0x471   :  { %v1602_v16 = vsel %vm85_vm0, %v1580_v58, 0.0  ;;  %v2032_v10 = vpop.eup %2031  ;;  %v1585_v40 = vmul.f32 %v2030_v43, %v2902_v46  ;;  %2043 = vtanh.f32 %v1553_v26 }
 0x472   :  { %1609 = vadd.xlane.f32.xlu0 %v1608_v54  ;;  %v1614_v8 = vsel %vm85_vm0, %v1584_v23, 0.0  ;;  %1603 = vadd.xlane.f32.xlu1 %v1602_v16  ;;  %v2034_v55 = vpop.eup %2033  ;;  %v1583_v28 = vmul.f32 %v2032_v10, %v2902_v46  ;;  %2045 = vtanh.f32 %v1556_v42 }
 0x473   :  { %1615 = vadd.xlane.f32.xlu2 %v1614_v8  ;;  %v1587_v44 = vmul.f32 %v2034_v55, %v2902_v46  ;;  %v2036_v57 = vpop.eup %2035  ;;  %v1617_v53 = vsel %vm85_vm0, %v1585_v40, 0.0 }
 0x474   :  { %v1611_v1 = vsel %vm85_vm0, %v1583_v28, 0.0  ;;  %v2038_v36 = vpop.eup %2037  ;;  %v1586_v21 = vmul.f32 %v2036_v57, %v2902_v46 }
 0x475   :  { %v1623_v27 = vsel %vm85_vm0, %v1587_v44, 0.0  ;;  %v2040_v37 = vpop.eup %2039  ;;  %v1588_v15 = vmul.f32 %v2038_v36, %v2902_v46 }
 0x476   :  { %v1590_v6 = vmul.f32 %v2040_v37, %v2902_v46  ;;  %v2042_v52 = vpop.eup %2041  ;;  %v1620_v49 = vsel %vm85_vm0, %v1586_v21, 0.0 }
 0x477   :  { %v1626_v29 = vsel %vm85_vm0, %v1588_v15, 0.0  ;;  %v2044_v47 = vpop.eup %2043  ;;  %v1589_v14 = vmul.f32 %v2042_v52, %v2902_v46 }
 0x478   :  { %v1632_v11 = vsel %vm85_vm0, %v1590_v6, 0.0  ;;  %v1591_v63 = vmul.f32 %v2044_v47, %v2902_v46  ;;  %v2046_v7 = vpop.eup %2045 }
 0x479   :  { %v1629_v33 = vsel %vm85_vm0, %v1589_v14, 0.0  ;;  %v1592_v35 = vmul.f32 %v2046_v7, %v2902_v46 }
 0x47a   :  { %1618 = vadd.xlane.f32.xlu0 %v1617_v53  ;;  %1612 = vadd.xlane.f32.xlu1 %v1611_v1  ;;  %v1635_v48 = vsel %vm85_vm0, %v1591_v63, 0.0 }
 0x47b   :  { %1624 = vadd.xlane.f32.xlu2 %v1623_v27  ;;  %v1638_v19 = vsel %vm85_vm0, %v1592_v35, 0.0 }
 0x482   :  { %1627 = vadd.xlane.f32.xlu0 %v1626_v29  ;;  %1621 = vadd.xlane.f32.xlu1 %v1620_v49 }
 0x483   :  { %1633 = vadd.xlane.f32.xlu2 %v1632_v11 }
 0x48a   :  { %1630 = vadd.xlane.f32.xlu1 %v1629_v33  ;;  %1636 = vadd.xlane.f32.xlu0 %v1635_v48 }
 0x492   :  { %1639 = vadd.xlane.f32.xlu1 %v1638_v19 }
 0x49b   :  { %1783 = vrot.lane.b32.xlu2 %v2882_v25, %s2142_s4 }
 0x49e   :  { %1779 = vrot.lane.b32.xlu0 %v2864_v62, %s2142_s4 }
 0x4ab   :  { %1781 = vrot.lane.b32.xlu1 %v2872_v12, %s2142_s4 }
 0x4c4   :  { %v1595_v13 = vpop.xlane.xlu1 %1594 }
 0x4d5   :  { %v1598_v0 = vpop.xlane.xlu2 %1597 }
 0x4dd   :  { %v1607_v59 = vpop.xlane.xlu2 %1606  ;;  %v1601_v5 = vpop.xlane.xlu0 %1600 }
 0x4de   :  { %v1641_v55 = vmax.f32 %v1595_v13, %v1607_v59 }
 0x4e5   :  { %v1610_v58 = vpop.xlane.xlu0 %1609  ;;  %v2947_v46 = vpop.xlane.xlu1 %1603 }
 0x4e6   :  { %v2949_v56 = vpop.xlane.xlu2 %1615  ;;  %v1644_v39 = vmax.f32 %v1598_v0, %v1610_v58 }
 0x4e7   :  { %v1650_v21 = vmax.f32 %v2947_v46, %v2949_v56 }
 0x4ed   :  { %v1619_v23 = vpop.xlane.xlu0 %1618  ;;  %v1613_v43 = vpop.xlane.xlu1 %1612 }
 0x4ee   :  { %v1625_v25 = vpop.xlane.xlu2 %1624  ;;  %v1647_v10 = vmax.f32 %v1601_v5, %v1613_v43  ;;  %v1642_v24 = vmax.f32 %v1641_v55, %v1619_v23 }
 0x4f0   :  { %v1648_v53 = vmax.f32 %v1647_v10, %v1625_v25 }
 0x4f5   :  { %v2951_v54 = vpop.xlane.xlu0 %1627  ;;  %v1622_v62 = vpop.xlane.xlu1 %1621 }
 0x4f6   :  { %v1645_v16 = vmax.f32 %v1644_v39, %v1622_v62  ;;  %v1634_v12 = vpop.xlane.xlu2 %1633  ;;  %v1651_v19 = vmax.f32 %v1650_v21, %v2951_v54 }
 0x4f8   :  { %v1646_v8 = vmax.f32 %v1645_v16, %v1634_v12 }
 0x4fa   :  { %v1654_v18 = vsub.f32 %v1598_v0, %v1646_v8  ;;  %v1658_v40 = vsub.f32 %v1610_v58, %v1646_v8  ;;  %v1662_v28 = vsub.f32 %v1622_v62, %v1646_v8  ;;  %v1666_v44 = vsub.f32 %v1634_v12, %v1646_v8 }
 0x4fc   :  { %v1671_v26 = vmul.f32 1.442695, %v1654_v18  ;;  %v1679_v57 = vmul.f32 1.442695, %v1658_v40  ;;  %v1687_v1 = vmul.f32 1.442695, %v1662_v28 }
 0x4fd   :  { %v1637_v36 = vpop.xlane.xlu0 %1636  ;;  %v1631_v27 = vpop.xlane.xlu1 %1630  ;;  %v1695_v15 = vmul.f32 1.442695, %v1666_v44 }
 0x4fe   :  { %2047 = vpow2.f32 %v1671_v26  ;;  %v1649_v37 = vmax.f32 %v1648_v53, %v1637_v36  ;;  %v1643_v60 = vmax.f32 %v1642_v24, %v1631_v27 }
 0x4ff   :  { %2049 = vpow2.f32 %v1679_v57 }
 0x500   :  { %v1655_v6 = vsub.f32 %v1601_v5, %v1649_v37  ;;  %v1659_v42 = vsub.f32 %v1613_v43, %v1649_v37  ;;  %v1663_v52 = vsub.f32 %v1625_v25, %v1649_v37  ;;  %2051 = vpow2.f32 %v1687_v1 }
 0x501   :  { %v1667_v29 = vsub.f32 %v1637_v36, %v1649_v37  ;;  %v1653_v49 = vsub.f32 %v1595_v13, %v1643_v60  ;;  %v1657_v47 = vsub.f32 %v1607_v59, %v1643_v60  ;;  %v1661_v33 = vsub.f32 %v1619_v23, %v1643_v60 }
 0x502   :  { %v1673_v11 = vmul.f32 1.442695, %v1655_v6  ;;  %v1681_v14 = vmul.f32 1.442695, %v1659_v42  ;;  %v1689_v63 = vmul.f32 1.442695, %v1663_v52  ;;  %2053 = vpow2.f32 %v1695_v15 }
 0x503   :  { %v1697_v48 = vmul.f32 1.442695, %v1667_v29  ;;  %v1665_v7 = vsub.f32 %v1631_v27, %v1643_v60  ;;  %v1669_v0 = vmul.f32 1.442695, %v1653_v49  ;;  %v1677_v5 = vmul.f32 1.442695, %v1657_v47 }
 0x504   :  { %v2048_v35 = vpop.eup %2047  ;;  %2055 = vpow2.f32 %v1673_v11  ;;  %v1685_v13 = vmul.f32 1.442695, %v1661_v33 }
 0x505   :  { %v2050_v58 = vpop.eup %2049  ;;  %2057 = vpow2.f32 %v1681_v14  ;;  %v1640_v43 = vpop.xlane.xlu1 %1639  ;;  %v1693_v62 = vmul.f32 1.442695, %v1665_v7 }
 0x506   :  { %v1704_v25 = vadd.f32 %v2050_v58, %v2048_v35  ;;  %2059 = vpow2.f32 %v1689_v63  ;;  %v1652_v59 = vmax.f32 %v1651_v19, %v1640_v43  ;;  %v2052_v39 = vpop.eup %2051 }
 0x507   :  { %2061 = vpow2.f32 %v1697_v48 }
 0x508   :  { %v1705_v23 = vadd.f32 %v2052_v39, %v1704_v25  ;;  %2063 = vpow2.f32 %v1669_v0  ;;  %v1656_v16 = vsub.f32 %v2947_v46, %v1652_v59  ;;  %v1660_v12 = vsub.f32 %v2949_v56, %v1652_v59  ;;  %v2054_v10 = vpop.eup %2053 }
 0x509   :  { %2065 = vpow2.f32 %v1677_v5  ;;  %v1664_v8 = vsub.f32 %v2951_v54, %v1652_v59  ;;  %v1668_v55 = vsub.f32 %v1640_v43, %v1652_v59 }
 0x50a   :  { %v2056_v18 = vpop.eup %2055  ;;  %v1706_v40 = vadd.f32 %v2054_v10, %v1705_v23  ;;  %2067 = vpow2.f32 %v1685_v13  ;;  %v1675_v28 = vmul.f32 1.442695, %v1656_v16  ;;  %v1683_v44 = vmul.f32 1.442695, %v1660_v12 }
 0x50b   :  { %v2058_v24 = vpop.eup %2057  ;;  %2069 = vpow2.f32 %v1693_v62  ;;  %v1691_v53 = vmul.f32 1.442695, %v1664_v8  ;;  %v1699_v46 = vmul.f32 1.442695, %v1668_v55 }
 0x50c   :  { %v2060_v26 = vpop.eup %2059  ;;  %2071 = vrcp.f32 %v1706_v40  ;;  %v1707_v57 = vadd.f32 %v2058_v24, %v2056_v18 }
 0x50d   :  { %v2062_v1 = vpop.eup %2061  ;;  %2073 = vpow2.f32 %v1675_v28 }
 0x50e   :  { %v2064_v56 = vpop.eup %2063  ;;  %v1708_v36 = vadd.f32 %v2060_v26, %v1707_v57  ;;  %2075 = vpow2.f32 %v1683_v44 }
 0x50f   :  { %v2066_v27 = vpop.eup %2065  ;;  %2077 = vpow2.f32 %v1691_v53 }
 0x510   :  { %v2068_v54 = vpop.eup %2067  ;;  %v1709_v37 = vadd.f32 %v2062_v1, %v1708_v36  ;;  %v1701_v60 = vadd.f32 %v2066_v27, %v2064_v56  ;;  %2079 = vpow2.f32 %v1699_v46 }
 0x511   :  { %v2070_v15 = vpop.eup %2069 }
 0x512   :  { %v2072_v21 = vpop.eup %2071  ;;  %2081 = vrcp.f32 %v1709_v37  ;;  %v1702_v6 = vadd.f32 %v2068_v54, %v1701_v60 }
 0x513   :  { %v2074_v42 = vpop.eup %2073  ;;  %v1726_v52 = vmul.f32 %v2072_v21, %v2052_v39  ;;  %v1718_v29 = vmul.f32 %v2072_v21, %v2048_v35  ;;  %v1722_v49 = vmul.f32 %v2072_v21, %v2050_v58  ;;  %v1730_v47 = vmul.f32 %v2072_v21, %v2054_v10 }
 0x514   :  { %v2076_v11 = vpop.eup %2075  ;;  %v1703_v14 = vadd.f32 %v2070_v15, %v1702_v6 }
 0x515   :  { %v1710_v63 = vadd.f32 %v2076_v11, %v2074_v42  ;;  %v1734_v33 = vmul.f32 %v1718_v29, %v2799_v22  ;;  %v1738_v48 = vmul.f32 %v1722_v49, %v2819_v2  ;;  %v1742_v7 = vmul.f32 %v1726_v52, %v2839_v41  ;;  %v2078_v19 = vpop.eup %2077 }
 0x516   :  { %2083 = vrcp.f32 %v1703_v14  ;;  %v1746_v0 = vmul.f32 %v1730_v47, %v2875_v61  ;;  %v2080_v5 = vpop.eup %2079 }
 0x517   :  { %v1711_v43 = vadd.f32 %v2078_v19, %v1710_v63  ;;  %v1756_v25 = vsel %vm85_vm0, %v1734_v33, 0.0  ;;  %v1757_v35 = vsel %vm85_vm0, %v1738_v48, 0.0  ;;  %v1759_v39 = vsel %vm85_vm0, %v1742_v7, 0.0 }
 0x518   :  { %v2082_v58 = vpop.eup %2081  ;;  %v1758_v13 = vadd.f32 %v1757_v35, %v1756_v25  ;;  %v1761_v41 = vsel %vm85_vm0, %v1746_v0, 0.0 }
 0x519   :  { %v1712_v59 = vadd.f32 %v2080_v5, %v1711_v43  ;;  %v1719_v22 = vmul.f32 %v2082_v58, %v2056_v18  ;;  %v1723_v62 = vmul.f32 %v2082_v58, %v2058_v24  ;;  %v1727_v23 = vmul.f32 %v2082_v58, %v2060_v26  ;;  %v1780_v24 = vpop.permute.xlu0 %1779 }
 0x51a   :  { %v1760_v2 = vadd.f32 %v1759_v39, %v1758_v13  ;;  %v1731_v16 = vmul.f32 %v2082_v58, %v2062_v1 }
 0x51b   :  { %2085 = vrcp.f32 %v1712_v59  ;;  %v1735_v61 = vmul.f32 %v1719_v22, %v2804_v31  ;;  %v1739_v12 = vmul.f32 %v1723_v62, %v2824_v3  ;;  %v1743_v55 = vmul.f32 %v1727_v23, %v2845_v45 }
 0x51c   :  { %v2084_v10 = vpop.eup %2083  ;;  %v1762_v8 = vadd.f32 %v1761_v41, %v1760_v2  ;;  %v1747_v45 = vmul.f32 %v1731_v16, %v2885_v9 }
 0x51d   :  { %v1717_v40 = vmul.f32 %v2084_v10, %v2064_v56  ;;  %v1721_v28 = vmul.f32 %v2084_v10, %v2066_v27  ;;  %v1725_v44 = vmul.f32 %v2084_v10, %v2068_v54  ;;  %v1729_v18 = vmul.f32 %v2084_v10, %v2070_v15  ;;  %v1782_v48 = vpop.permute.xlu1 %1781 }
 0x51e   :  { %v1790_v57 = vsel %vm85_vm0, %v1762_v8, %v1780_v24  ;;  %v1763_v26 = vsel %vm85_vm0, %v1735_v61, 0.0  ;;  %v1764_v53 = vsel %vm85_vm0, %v1739_v12, 0.0  ;;  %v1766_v37 = vsel %vm85_vm0, %v1743_v55, 0.0 }
 0x51f   :  { %v1733_v31 = vmul.f32 %v1717_v40, %v2794_v38  ;;  %v1737_v3 = vmul.f32 %v1721_v28, %v2814_v17  ;;  %v1741_v1 = vmul.f32 %v1725_v44, %v2834_v51  ;;  %1795 = vst.msk [vmem:[#allocation5 + $0x8] sm:$0xff] %vm1793_vm2, %v1790_v57  ;;  %v1765_v46 = vadd.f32 %v1764_v53, %v1763_v26 }
 0x520   :  { %v1745_v36 = vmul.f32 %v1729_v18, %v2861_v4  ;;  %v1768_v9 = vsel %vm85_vm0, %v1747_v45, 0.0 }
 0x521   :  { %v2086_v56 = vpop.eup %2085  ;;  %v1749_v27 = vsel %vm85_vm0, %v1733_v31, 0.0  ;;  %v1750_v54 = vsel %vm85_vm0, %v1737_v3, 0.0  ;;  %v1752_v51 = vsel %vm85_vm0, %v1741_v1, 0.0  ;;  %v1767_v6 = vadd.f32 %v1766_v37, %v1765_v46 }
 0x522   :  { %v1751_v60 = vadd.f32 %v1750_v54, %v1749_v27  ;;  %v1720_v38 = vmul.f32 %v2086_v56, %v2074_v42  ;;  %v1724_v15 = vmul.f32 %v2086_v56, %v2076_v11  ;;  %v1728_v17 = vmul.f32 %v2086_v56, %v2078_v19 }
 0x523   :  { %v1732_v21 = vmul.f32 %v2086_v56, %v2080_v5  ;;  %v1754_v47 = vsel %vm85_vm0, %v1745_v36, 0.0  ;;  %v1769_v14 = vadd.f32 %v1768_v9, %v1767_v6  ;;  %v1784_v5 = vpop.permute.xlu2 %1783 }
 0x524   :  { %v1753_v52 = vadd.f32 %v1752_v51, %v1751_v60  ;;  %v1736_v29 = vmul.f32 %v1720_v38, %v2809_v30  ;;  %v1740_v4 = vmul.f32 %v1724_v15, %v2829_v50  ;;  %v1744_v49 = vmul.f32 %v1728_v17, %v2855_v32 }
 0x525   :  { %v1748_v42 = vmul.f32 %v1732_v21, %v2892_v20  ;;  %v1791_v19 = vsel %vm85_vm0, %v1769_v14, %v1782_v48 }
 0x526   :  { %v1755_v63 = vadd.f32 %v1754_v47, %v1753_v52  ;;  %v1770_v11 = vsel %vm85_vm0, %v1736_v29, 0.0  ;;  %v1771_v33 = vsel %vm85_vm0, %v1740_v4, 0.0  ;;  %v1773_v30 = vsel %vm85_vm0, %v1744_v49, 0.0  ;;  %1796 = vst.msk [vmem:[#allocation5 + $0x10] sm:$0xff] %vm1793_vm2, %v1791_v19 }
 0x527   :  { %v1772_v7 = vadd.f32 %v1771_v33, %v1770_v11  ;;  %v1775_v20 = vsel %vm85_vm0, %v1748_v42, 0.0 }
 0x528   :  { %v1789_v50 = vsel %vm85_vm0, %v1755_v63, %v2945_v34 }
 0x529   :  { %v1774_v32 = vadd.f32 %v1773_v30, %v1772_v7  ;;  %1794 = vst.msk [vmem:[#allocation5] sm:$0xff] %vm1793_vm2, %v1789_v50 }
 0x52b   :  { %v1776_v0 = vadd.f32 %v1775_v20, %v1774_v32 }
 0x52d   :  { %v1792_v43 = vsel %vm85_vm0, %v1776_v0, %v1784_v5 }
 0x52e   :  { %1797 = vst.msk [vmem:[#allocation5 + $0x18] sm:$0xff] %vm1793_vm2, %v1792_v43 }
 0x52f   :  { %1810 = dma.vmem_to_hbm [thread:$0]  %s1803_s17, 512, %s1805_s20, [#allocation4], %s2140_s29, %s2140_s29, %s2141_s30  }
 0x530   :  { %2137 = dma.done.wait [#allocation4], 512  }
 0x531   :  { %2138 = vsyncadd [#allocation4], 4294966784 }
 0x532   :  { %1815 = vsyncpa [#allocation3], 1 }
 0x533   :  { %1816 = vsyncpa [#allocation4], 1 }

</bundles_post_ra>
